<compile_context>
chip_gen: v5e
topology: v5e:2x2
jax: 0.10.0
libtpu: 0.0.40
codegen_flags: <defaults>
</compile_context>

<pallas_src>
import numpy as np
import jax
import jax.numpy as jnp
from jax.experimental import pallas as pl
from jax.experimental.pallas import tpu as pltpu

# ----------------------------- model hyper-params -----------------------------
BATCH = 2
NUM_NODES = 16
RNN_UNITS = 32
OUTPUT_DIM = 4
MAX_DIFFUSION_STEP = 2
NUM_RNN_LAYERS = 2
FILTER_TYPE = "dual_random_walk"          # -> 2 diffusion supports
NUM_SUPPORTS = 2
NUM_MATRICES = NUM_SUPPORTS * MAX_DIFFUSION_STEP + 1
BN = BATCH * NUM_NODES                    # batch folded into the node axis


# ----------------------------- support construction (glue, numpy) -------------
def calculate_random_walk_matrix(adj):
    d = adj.sum(axis=1)
    d_inv = np.where(d > 0, 1.0 / d, 0.0)
    return d_inv[:, None] * adj            # D^{-1} A


def build_supports(adj, filter_type):
    sups = []
    if filter_type == "dual_random_walk":
        sups.append(calculate_random_walk_matrix(adj).T)
        sups.append(calculate_random_walk_matrix(adj.T).T)
    elif filter_type == "random_walk":
        sups.append(calculate_random_walk_matrix(adj).T)
    else:
        # TODO(synk): scaled-Laplacian filter type not reproduced (needs scipy eigsh); using random_walk.
        sups.append(calculate_random_walk_matrix(adj).T)
    return np.stack(sups).astype(np.float32)


def build_block_diag_supports(adj, filter_type, batch):
    """Block-diagonalize each (N, N) support to (B*N, B*N) so the kernel can apply the graph
    diffusion to the batch-folded (B*N, F) activations with a single MXU matmul."""
    sups = build_supports(adj, filter_type)                 # (S, N, N)
    s, n, _ = sups.shape
    bd = np.zeros((s, batch * n, batch * n), np.float32)
    for b in range(batch):
        bd[:, b * n:(b + 1) * n, b * n:(b + 1) * n] = sups
    return jnp.asarray(bd)


# ----------------------------- fused Pallas kernel -----------------------------
def _mm(a, b):
    return jnp.dot(a, b, preferred_element_type=jnp.float32)


def _diffuse_cat(sups, z):
    """Diffusion features of z: (B*N, F) -> (B*N, M*F), matrix-major along K.

    Mirrors DCGRUCell._gconv verbatim: x1, x0 = x2, x1 is carried across supports
    (x0 is intentionally NOT reset to the original at the start of each support)."""
    z0 = z
    feats = [z0]
    if MAX_DIFFUSION_STEP > 0:
        for s in sups:
            z1 = _mm(s, z0)
            feats.append(z1)
            for _k in range(2, MAX_DIFFUSION_STEP + 1):
                z2 = 2.0 * _mm(s, z1) - z0
                feats.append(z2)
                z1, z0 = z2, z1
    return jnp.concatenate(feats, axis=-1)


def decoder_step_kernel(*refs):
    # inputs: x (BN, Din0), h (L, BN, U), sup_bd (S, BN, BN),
    #         per layer: wgi (M*Din, 2U), wgh (M*U, 2U), bg (1, 2U),
    #                    wci (M*Din,  U), wch (M*U,  U), bc (1,  U),
    #         wproj (U, OUT), bproj (1, OUT)
    # outputs: out (BN, OUT), hid (L, BN, U)
    x_ref, h_ref, sup_ref = refs[:3]
    layer_refs = refs[3:3 + 6 * NUM_RNN_LAYERS]
    wproj_ref, bproj_ref = refs[3 + 6 * NUM_RNN_LAYERS:3 + 6 * NUM_RNN_LAYERS + 2]
    out_ref, hid_ref = refs[3 + 6 * NUM_RNN_LAYERS + 2:]

    sups = [sup_ref[i] for i in range(NUM_SUPPORTS)]        # each (BN, BN)

    def dcgru_cell(xin, hx, wgi, wgh, bg, wci, wch, bc):
        # xin: (BN, Din), hx: (BN, U)
        dx = _diffuse_cat(sups, xin)                        # (BN, M*Din) shared by gate & candidate
        dh = _diffuse_cat(sups, hx)                         # (BN, M*U)
        gate = jax.nn.sigmoid(_mm(dx, wgi) + _mm(dh, wgh) + bg)   # (BN, 2U)
        r = gate[:, :RNN_UNITS]
        u = gate[:, RNN_UNITS:]
        drh = _diffuse_cat(sups, r * hx)                    # (BN, M*U)
        c = jnp.tanh(_mm(dx, wci) + _mm(drh, wch) + bc)     # (BN, U)
        return u * hx + (1.0 - u) * c

    xin = x_ref[...]
    for l in range(NUM_RNN_LAYERS):
        wgi, wgh, bg, wci, wch, bc = (r[...] for r in layer_refs[6 * l:6 * l + 6])
        h_new = dcgru_cell(xin, h_ref[l], wgi, wgh, bg, wci, wch, bc)
        hid_ref[l] = h_new
        xin = h_new

    # projection epilogue on the already-resident top-layer state
    out_ref[...] = _mm(xin, wproj_ref[...]) + bproj_ref[...]


# ----------------------------- pallas_call wrapper -----------------------------
_VMEM = pl.BlockSpec(memory_space=pltpu.MemorySpace.VMEM)
_N_INPUTS = 3 + 6 * NUM_RNN_LAYERS + 2


def decoder_forward(params, sup_bd, inputs_flat, hidden_flat):
    """inputs_flat: (B, N*output_dim); hidden_flat: (L, B, N*rnn_units).
    Returns (output (B, N*output_dim), new_hidden (L, B, N*rnn_units))."""
    # (B, N*F) row-major == (B*N, F): pure-metadata reshapes outside the kernel.
    x = inputs_flat.reshape(BN, OUTPUT_DIM)
    h = hidden_flat.reshape(NUM_RNN_LAYERS, BN, RNN_UNITS)

    args = [x, h, sup_bd]
    for p in params["layers"]:
        args += [p["wgi"], p["wgh"], p["bg"], p["wci"], p["wch"], p["bc"]]
    args += [params["w_proj"], params["b_proj"]]

    out_bn, hid_bn = pl.pallas_call(
        decoder_step_kernel,
        out_shape=(jax.ShapeDtypeStruct((BN, OUTPUT_DIM), jnp.float32),
                   jax.ShapeDtypeStruct((NUM_RNN_LAYERS, BN, RNN_UNITS), jnp.float32)),
        in_specs=[_VMEM] * _N_INPUTS,
        out_specs=(_VMEM, _VMEM),
    )(*args)

    out = out_bn.reshape(BATCH, NUM_NODES * OUTPUT_DIM)
    new_hidden = hid_bn.reshape(NUM_RNN_LAYERS, BATCH, NUM_NODES * RNN_UNITS)
    return out, new_hidden


# ----------------------------- parameter init (deterministic) -----------------
def xavier_normal(key, shape, fan_in, fan_out):
    std = np.sqrt(2.0 / (fan_in + fan_out))
    return (jax.random.normal(key, shape, jnp.float32) * std).astype(jnp.float32)


def init_params(key):
    # Torch stores each gconv weight as a single (C*M, O) matrix with K index =
    # feature_idx * M + matrix_idx and features ordered [inputs | state].  Here it is kept
    # split and pre-permuted as wi: (M*Din, O), wh: (M*U, O) with K index = matrix*F + feature
    # (matrix-major), matching the kernel's concatenated diffusion-feature layout.
    params = {"layers": []}
    for l in range(NUM_RNN_LAYERS):
        din = OUTPUT_DIM if l == 0 else RNN_UNITS
        c = din + RNN_UNITS
        k = jax.random.fold_in(key, l)
        k1, k2, k3, k4 = jax.random.split(k, 4)
        wgi = xavier_normal(k1, (NUM_MATRICES * din, 2 * RNN_UNITS), c * NUM_MATRICES, 2 * RNN_UNITS)
        wgh = xavier_normal(k2, (NUM_MATRICES * RNN_UNITS, 2 * RNN_UNITS), c * NUM_MATRICES, 2 * RNN_UNITS)
        bg = jnp.ones((1, 2 * RNN_UNITS), jnp.float32)          # bias_start = 1.0
        wci = xavier_normal(k3, (NUM_MATRICES * din, RNN_UNITS), c * NUM_MATRICES, RNN_UNITS)
        wch = xavier_normal(k4, (NUM_MATRICES * RNN_UNITS, RNN_UNITS), c * NUM_MATRICES, RNN_UNITS)
        bc = jnp.zeros((1, RNN_UNITS), jnp.float32)             # bias_start = 0.0
        params["layers"].append(dict(wgi=wgi, wgh=wgh, bg=bg, wci=wci, wch=wch, bc=bc))
    # projection nn.Linear(rnn_units, output_dim): uniform(-1/sqrt(U), 1/sqrt(U))
    kp1, kp2 = jax.random.split(jax.random.fold_in(key, 1000))
    bound = 1.0 / np.sqrt(RNN_UNITS)
    params["w_proj"] = jax.random.uniform(kp1, (RNN_UNITS, OUTPUT_DIM), jnp.float32, -bound, bound)
    params["b_proj"] = jax.random.uniform(kp2, (1, OUTPUT_DIM), jnp.float32, -bound, bound)
    return params


# ----------------------------- main --------------------------------------------
if __name__ == "__main__":
    key = jax.random.PRNGKey(0)
    k_adj, k_in, k_h, k_p = jax.random.split(key, 4)

    # deterministic synthetic adjacency (positive weights, nonzero row sums)
    adj_np = np.asarray(jax.random.uniform(k_adj, (NUM_NODES, NUM_NODES),
                                           jnp.float32, 0.05, 1.0))
    sup_bd = build_block_diag_supports(adj_np, FILTER_TYPE, BATCH)   # (S, B*N, B*N)

    params = init_params(k_p)

    inputs = jax.random.normal(k_in, (BATCH, NUM_NODES * OUTPUT_DIM), jnp.float32)
    hidden = jax.random.normal(k_h, (NUM_RNN_LAYERS, BATCH, NUM_NODES * RNN_UNITS),
                               jnp.float32)

    fwd = jax.jit(decoder_forward)
    out, new_hidden = fwd(params, sup_bd, inputs, hidden)
    jax.block_until_ready((out, new_hidden))

    assert out.shape == (BATCH, NUM_NODES * OUTPUT_DIM)
    assert new_hidden.shape == (NUM_RNN_LAYERS, BATCH, NUM_NODES * RNN_UNITS)
    assert np.all(np.isfinite(np.asarray(out)))
    assert np.all(np.isfinite(np.asarray(new_hidden)))
    print("KERNEL_OK")
</pallas_src>

<mosaic_0001>
module attributes {stable_mosaic.version = 11 : i64} {
  func.func @decoder_step_kernel(%arg0: memref<32x4xf32, #tpu.memory_space<vmem>>, %arg1: memref<2x32x32xf32, #tpu.memory_space<vmem>>, %arg2: memref<2x32x32xf32, #tpu.memory_space<vmem>>, %arg3: memref<20x64xf32, #tpu.memory_space<vmem>>, %arg4: memref<160x64xf32, #tpu.memory_space<vmem>>, %arg5: memref<1x64xf32, #tpu.memory_space<vmem>>, %arg6: memref<20x32xf32, #tpu.memory_space<vmem>>, %arg7: memref<160x32xf32, #tpu.memory_space<vmem>>, %arg8: memref<1x32xf32, #tpu.memory_space<vmem>>, %arg9: memref<160x64xf32, #tpu.memory_space<vmem>>, %arg10: memref<160x64xf32, #tpu.memory_space<vmem>>, %arg11: memref<1x64xf32, #tpu.memory_space<vmem>>, %arg12: memref<160x32xf32, #tpu.memory_space<vmem>>, %arg13: memref<160x32xf32, #tpu.memory_space<vmem>>, %arg14: memref<1x32xf32, #tpu.memory_space<vmem>>, %arg15: memref<32x4xf32, #tpu.memory_space<vmem>>, %arg16: memref<1x4xf32, #tpu.memory_space<vmem>>, %arg17: memref<32x4xf32, #tpu.memory_space<vmem>>, %arg18: memref<2x32x32xf32, #tpu.memory_space<vmem>>) attributes {dimension_semantics = [], scalar_prefetch = 0 : i64, scratch_operands = 0 : i64, tpu.core_type = #tpu.core_type<tc>} {
    %c0 = arith.constant 0 : index
    %c0_0 = arith.constant 0 : index
    %c0_1 = arith.constant 0 : index
    %0 = vector.load %arg2[%c0, %c0_0, %c0_1] : memref<2x32x32xf32, #tpu.memory_space<vmem>>, vector<1x32x32xf32>
    %1 = vector.shape_cast %0 : vector<1x32x32xf32> to vector<32x32xf32>
    %c1 = arith.constant 1 : index
    %c0_2 = arith.constant 0 : index
    %c0_3 = arith.constant 0 : index
    %2 = vector.load %arg2[%c1, %c0_2, %c0_3] : memref<2x32x32xf32, #tpu.memory_space<vmem>>, vector<1x32x32xf32>
    %3 = vector.shape_cast %2 : vector<1x32x32xf32> to vector<32x32xf32>
    %c0_4 = arith.constant 0 : index
    %c0_5 = arith.constant 0 : index
    %4 = vector.load %arg0[%c0_4, %c0_5] : memref<32x4xf32, #tpu.memory_space<vmem>>, vector<32x4xf32>
    %c0_6 = arith.constant 0 : index
    %c0_7 = arith.constant 0 : index
    %5 = vector.load %arg3[%c0_6, %c0_7] : memref<20x64xf32, #tpu.memory_space<vmem>>, vector<20x64xf32>
    %c0_8 = arith.constant 0 : index
    %c0_9 = arith.constant 0 : index
    %6 = vector.load %arg4[%c0_8, %c0_9] : memref<160x64xf32, #tpu.memory_space<vmem>>, vector<160x64xf32>
    %c0_10 = arith.constant 0 : index
    %c0_11 = arith.constant 0 : index
    %7 = vector.load %arg5[%c0_10, %c0_11] : memref<1x64xf32, #tpu.memory_space<vmem>>, vector<1x64xf32>
    %c0_12 = arith.constant 0 : index
    %c0_13 = arith.constant 0 : index
    %8 = vector.load %arg6[%c0_12, %c0_13] : memref<20x32xf32, #tpu.memory_space<vmem>>, vector<20x32xf32>
    %c0_14 = arith.constant 0 : index
    %c0_15 = arith.constant 0 : index
    %9 = vector.load %arg7[%c0_14, %c0_15] : memref<160x32xf32, #tpu.memory_space<vmem>>, vector<160x32xf32>
    %c0_16 = arith.constant 0 : index
    %c0_17 = arith.constant 0 : index
    %10 = vector.load %arg8[%c0_16, %c0_17] : memref<1x32xf32, #tpu.memory_space<vmem>>, vector<1x32xf32>
    %c0_18 = arith.constant 0 : index
    %c0_19 = arith.constant 0 : index
    %c0_20 = arith.constant 0 : index
    %11 = vector.load %arg1[%c0_18, %c0_19, %c0_20] : memref<2x32x32xf32, #tpu.memory_space<vmem>>, vector<1x32x32xf32>
    %12 = vector.shape_cast %11 : vector<1x32x32xf32> to vector<32x32xf32>
    %cst = arith.constant dense<0.000000e+00> : vector<32x4xf32>
    %13 = tpu.matmul %1, %4, %cst {dimension_numbers = #tpu.dot_dimension_numbers<[1], [0], [0], [1], [0, 0, 1, 1], [], []>} : vector<32x32xf32>, vector<32x4xf32>, vector<32x4xf32> -> vector<32x4xf32>
    %cst_21 = arith.constant dense<0.000000e+00> : vector<32x4xf32>
    %14 = tpu.matmul %1, %13, %cst_21 {dimension_numbers = #tpu.dot_dimension_numbers<[1], [0], [0], [1], [0, 0, 1, 1], [], []>} : vector<32x32xf32>, vector<32x4xf32>, vector<32x4xf32> -> vector<32x4xf32>
    %cst_22 = arith.constant 2.000000e+00 : f32
    %15 = vector.broadcast %cst_22 : f32 to vector<32x4xf32>
    %16 = arith.mulf %15, %14 : vector<32x4xf32>
    %17 = arith.subf %16, %4 : vector<32x4xf32>
    %cst_23 = arith.constant dense<0.000000e+00> : vector<32x4xf32>
    %18 = tpu.matmul %3, %13, %cst_23 {dimension_numbers = #tpu.dot_dimension_numbers<[1], [0], [0], [1], [0, 0, 1, 1], [], []>} : vector<32x32xf32>, vector<32x4xf32>, vector<32x4xf32> -> vector<32x4xf32>
    %cst_24 = arith.constant dense<0.000000e+00> : vector<32x4xf32>
    %19 = tpu.matmul %3, %18, %cst_24 {dimension_numbers = #tpu.dot_dimension_numbers<[1], [0], [0], [1], [0, 0, 1, 1], [], []>} : vector<32x32xf32>, vector<32x4xf32>, vector<32x4xf32> -> vector<32x4xf32>
    %cst_25 = arith.constant 2.000000e+00 : f32
    %20 = vector.broadcast %cst_25 : f32 to vector<32x4xf32>
    %21 = arith.mulf %20, %19 : vector<32x4xf32>
    %22 = arith.subf %21, %13 : vector<32x4xf32>
    %23 = tpu.concatenate %4, %13, %17, %18, %22 in 1 : vector<32x4xf32>, vector<32x4xf32>, vector<32x4xf32>, vector<32x4xf32>, vector<32x4xf32> -> vector<32x20xf32>
    %cst_26 = arith.constant dense<0.000000e+00> : vector<32x32xf32>
    %24 = tpu.matmul %1, %12, %cst_26 {dimension_numbers = #tpu.dot_dimension_numbers<[1], [0], [0], [1], [0, 0, 1, 1], [], []>} : vector<32x32xf32>, vector<32x32xf32>, vector<32x32xf32> -> vector<32x32xf32>
    %cst_27 = arith.constant dense<0.000000e+00> : vector<32x32xf32>
    %25 = tpu.matmul %1, %24, %cst_27 {dimension_numbers = #tpu.dot_dimension_numbers<[1], [0], [0], [1], [0, 0, 1, 1], [], []>} : vector<32x32xf32>, vector<32x32xf32>, vector<32x32xf32> -> vector<32x32xf32>
    %cst_28 = arith.constant 2.000000e+00 : f32
    %26 = vector.broadcast %cst_28 : f32 to vector<32x32xf32>
    %27 = arith.mulf %26, %25 : vector<32x32xf32>
    %28 = arith.subf %27, %12 : vector<32x32xf32>
    %cst_29 = arith.constant dense<0.000000e+00> : vector<32x32xf32>
    %29 = tpu.matmul %3, %24, %cst_29 {dimension_numbers = #tpu.dot_dimension_numbers<[1], [0], [0], [1], [0, 0, 1, 1], [], []>} : vector<32x32xf32>, vector<32x32xf32>, vector<32x32xf32> -> vector<32x32xf32>
    %cst_30 = arith.constant dense<0.000000e+00> : vector<32x32xf32>
    %30 = tpu.matmul %3, %29, %cst_30 {dimension_numbers = #tpu.dot_dimension_numbers<[1], [0], [0], [1], [0, 0, 1, 1], [], []>} : vector<32x32xf32>, vector<32x32xf32>, vector<32x32xf32> -> vector<32x32xf32>
    %cst_31 = arith.constant 2.000000e+00 : f32
    %31 = vector.broadcast %cst_31 : f32 to vector<32x32xf32>
    %32 = arith.mulf %31, %30 : vector<32x32xf32>
    %33 = arith.subf %32, %24 : vector<32x32xf32>
    %34 = tpu.concatenate %12, %24, %28, %29, %33 in 1 : vector<32x32xf32>, vector<32x32xf32>, vector<32x32xf32>, vector<32x32xf32>, vector<32x32xf32> -> vector<32x160xf32>
    %cst_32 = arith.constant dense<0.000000e+00> : vector<32x64xf32>
    %35 = tpu.matmul %23, %5, %cst_32 {dimension_numbers = #tpu.dot_dimension_numbers<[1], [0], [0], [1], [0, 0, 1, 1], [], []>} : vector<32x20xf32>, vector<20x64xf32>, vector<32x64xf32> -> vector<32x64xf32>
    %cst_33 = arith.constant dense<0.000000e+00> : vector<32x64xf32>
    %36 = tpu.matmul %34, %6, %cst_33 {dimension_numbers = #tpu.dot_dimension_numbers<[1], [0], [0], [1], [0, 0, 1, 1], [], []>} : vector<32x160xf32>, vector<160x64xf32>, vector<32x64xf32> -> vector<32x64xf32>
    %37 = arith.addf %35, %36 : vector<32x64xf32>
    %38 = vector.broadcast %7 : vector<1x64xf32> to vector<32x64xf32>
    %39 = arith.addf %37, %38 : vector<32x64xf32>
    %40 = arith.negf %39 : vector<32x64xf32>
    %41 = math.exp %40 : vector<32x64xf32>
    %cst_34 = arith.constant 1.000000e+00 : f32
    %42 = vector.broadcast %cst_34 : f32 to vector<32x64xf32>
    %43 = arith.addf %42, %41 : vector<32x64xf32>
    %44 = arith.divf %42, %43 : vector<32x64xf32>
    %45 = vector.extract_strided_slice %44 {offsets = [0, 0], sizes = [32, 32], strides = [1, 1]} : vector<32x64xf32> to vector<32x32xf32>
    %46 = vector.extract_strided_slice %44 {offsets = [0, 32], sizes = [32, 32], strides = [1, 1]} : vector<32x64xf32> to vector<32x32xf32>
    %47 = arith.mulf %45, %12 : vector<32x32xf32>
    %cst_35 = arith.constant dense<0.000000e+00> : vector<32x32xf32>
    %48 = tpu.matmul %1, %47, %cst_35 {dimension_numbers = #tpu.dot_dimension_numbers<[1], [0], [0], [1], [0, 0, 1, 1], [], []>} : vector<32x32xf32>, vector<32x32xf32>, vector<32x32xf32> -> vector<32x32xf32>
    %cst_36 = arith.constant dense<0.000000e+00> : vector<32x32xf32>
    %49 = tpu.matmul %1, %48, %cst_36 {dimension_numbers = #tpu.dot_dimension_numbers<[1], [0], [0], [1], [0, 0, 1, 1], [], []>} : vector<32x32xf32>, vector<32x32xf32>, vector<32x32xf32> -> vector<32x32xf32>
    %cst_37 = arith.constant 2.000000e+00 : f32
    %50 = vector.broadcast %cst_37 : f32 to vector<32x32xf32>
    %51 = arith.mulf %50, %49 : vector<32x32xf32>
    %52 = arith.subf %51, %47 : vector<32x32xf32>
    %cst_38 = arith.constant dense<0.000000e+00> : vector<32x32xf32>
    %53 = tpu.matmul %3, %48, %cst_38 {dimension_numbers = #tpu.dot_dimension_numbers<[1], [0], [0], [1], [0, 0, 1, 1], [], []>} : vector<32x32xf32>, vector<32x32xf32>, vector<32x32xf32> -> vector<32x32xf32>
    %cst_39 = arith.constant dense<0.000000e+00> : vector<32x32xf32>
    %54 = tpu.matmul %3, %53, %cst_39 {dimension_numbers = #tpu.dot_dimension_numbers<[1], [0], [0], [1], [0, 0, 1, 1], [], []>} : vector<32x32xf32>, vector<32x32xf32>, vector<32x32xf32> -> vector<32x32xf32>
    %cst_40 = arith.constant 2.000000e+00 : f32
    %55 = vector.broadcast %cst_40 : f32 to vector<32x32xf32>
    %56 = arith.mulf %55, %54 : vector<32x32xf32>
    %57 = arith.subf %56, %48 : vector<32x32xf32>
    %58 = tpu.concatenate %47, %48, %52, %53, %57 in 1 : vector<32x32xf32>, vector<32x32xf32>, vector<32x32xf32>, vector<32x32xf32>, vector<32x32xf32> -> vector<32x160xf32>
    %cst_41 = arith.constant dense<0.000000e+00> : vector<32x32xf32>
    %59 = tpu.matmul %23, %8, %cst_41 {dimension_numbers = #tpu.dot_dimension_numbers<[1], [0], [0], [1], [0, 0, 1, 1], [], []>} : vector<32x20xf32>, vector<20x32xf32>, vector<32x32xf32> -> vector<32x32xf32>
    %cst_42 = arith.constant dense<0.000000e+00> : vector<32x32xf32>
    %60 = tpu.matmul %58, %9, %cst_42 {dimension_numbers = #tpu.dot_dimension_numbers<[1], [0], [0], [1], [0, 0, 1, 1], [], []>} : vector<32x160xf32>, vector<160x32xf32>, vector<32x32xf32> -> vector<32x32xf32>
    %61 = arith.addf %59, %60 : vector<32x32xf32>
    %62 = vector.broadcast %10 : vector<1x32xf32> to vector<32x32xf32>
    %63 = arith.addf %61, %62 : vector<32x32xf32>
    %64 = math.tanh %63 : vector<32x32xf32>
    %65 = arith.mulf %46, %12 : vector<32x32xf32>
    %cst_43 = arith.constant 1.000000e+00 : f32
    %66 = vector.broadcast %cst_43 : f32 to vector<32x32xf32>
    %67 = arith.subf %66, %46 : vector<32x32xf32>
    %68 = arith.mulf %67, %64 : vector<32x32xf32>
    %69 = arith.addf %65, %68 : vector<32x32xf32>
    %c0_44 = arith.constant 0 : index
    %c0_45 = arith.constant 0 : index
    %c0_46 = arith.constant 0 : index
    %70 = vector.load %arg18[%c0_44, %c0_45, %c0_46] : memref<2x32x32xf32, #tpu.memory_space<vmem>>, vector<1x32x32xf32>
    %71 = vector.shape_cast %70 : vector<1x32x32xf32> to vector<32x32xf32>
    %72 = vector.shape_cast %69 : vector<32x32xf32> to vector<1x32x32xf32>
    tpu.vector_store %arg18[%c0_44, %c0_45, %c0_46], %72 {strides = array<i32>} : memref<2x32x32xf32, #tpu.memory_space<vmem>>, vector<1x32x32xf32>,
    %c0_47 = arith.constant 0 : index
    %c0_48 = arith.constant 0 : index
    %73 = vector.load %arg9[%c0_47, %c0_48] : memref<160x64xf32, #tpu.memory_space<vmem>>, vector<160x64xf32>
    %c0_49 = arith.constant 0 : index
    %c0_50 = arith.constant 0 : index
    %74 = vector.load %arg10[%c0_49, %c0_50] : memref<160x64xf32, #tpu.memory_space<vmem>>, vector<160x64xf32>
    %c0_51 = arith.constant 0 : index
    %c0_52 = arith.constant 0 : index
    %75 = vector.load %arg11[%c0_51, %c0_52] : memref<1x64xf32, #tpu.memory_space<vmem>>, vector<1x64xf32>
    %c0_53 = arith.constant 0 : index
    %c0_54 = arith.constant 0 : index
    %76 = vector.load %arg12[%c0_53, %c0_54] : memref<160x32xf32, #tpu.memory_space<vmem>>, vector<160x32xf32>
    %c0_55 = arith.constant 0 : index
    %c0_56 = arith.constant 0 : index
    %77 = vector.load %arg13[%c0_55, %c0_56] : memref<160x32xf32, #tpu.memory_space<vmem>>, vector<160x32xf32>
    %c0_57 = arith.constant 0 : index
    %c0_58 = arith.constant 0 : index
    %78 = vector.load %arg14[%c0_57, %c0_58] : memref<1x32xf32, #tpu.memory_space<vmem>>, vector<1x32xf32>
    %c1_59 = arith.constant 1 : index
    %c0_60 = arith.constant 0 : index
    %c0_61 = arith.constant 0 : index
    %79 = vector.load %arg1[%c1_59, %c0_60, %c0_61] : memref<2x32x32xf32, #tpu.memory_space<vmem>>, vector<1x32x32xf32>
    %80 = vector.shape_cast %79 : vector<1x32x32xf32> to vector<32x32xf32>
    %cst_62 = arith.constant dense<0.000000e+00> : vector<32x32xf32>
    %81 = tpu.matmul %1, %69, %cst_62 {dimension_numbers = #tpu.dot_dimension_numbers<[1], [0], [0], [1], [0, 0, 1, 1], [], []>} : vector<32x32xf32>, vector<32x32xf32>, vector<32x32xf32> -> vector<32x32xf32>
    %cst_63 = arith.constant dense<0.000000e+00> : vector<32x32xf32>
    %82 = tpu.matmul %1, %81, %cst_63 {dimension_numbers = #tpu.dot_dimension_numbers<[1], [0], [0], [1], [0, 0, 1, 1], [], []>} : vector<32x32xf32>, vector<32x32xf32>, vector<32x32xf32> -> vector<32x32xf32>
    %cst_64 = arith.constant 2.000000e+00 : f32
    %83 = vector.broadcast %cst_64 : f32 to vector<32x32xf32>
    %84 = arith.mulf %83, %82 : vector<32x32xf32>
    %85 = arith.subf %84, %69 : vector<32x32xf32>
    %cst_65 = arith.constant dense<0.000000e+00> : vector<32x32xf32>
    %86 = tpu.matmul %3, %81, %cst_65 {dimension_numbers = #tpu.dot_dimension_numbers<[1], [0], [0], [1], [0, 0, 1, 1], [], []>} : vector<32x32xf32>, vector<32x32xf32>, vector<32x32xf32> -> vector<32x32xf32>
    %cst_66 = arith.constant dense<0.000000e+00> : vector<32x32xf32>
    %87 = tpu.matmul %3, %86, %cst_66 {dimension_numbers = #tpu.dot_dimension_numbers<[1], [0], [0], [1], [0, 0, 1, 1], [], []>} : vector<32x32xf32>, vector<32x32xf32>, vector<32x32xf32> -> vector<32x32xf32>
    %cst_67 = arith.constant 2.000000e+00 : f32
    %88 = vector.broadcast %cst_67 : f32 to vector<32x32xf32>
    %89 = arith.mulf %88, %87 : vector<32x32xf32>
    %90 = arith.subf %89, %81 : vector<32x32xf32>
    %91 = tpu.concatenate %69, %81, %85, %86, %90 in 1 : vector<32x32xf32>, vector<32x32xf32>, vector<32x32xf32>, vector<32x32xf32>, vector<32x32xf32> -> vector<32x160xf32>
    %cst_68 = arith.constant dense<0.000000e+00> : vector<32x32xf32>
    %92 = tpu.matmul %1, %80, %cst_68 {dimension_numbers = #tpu.dot_dimension_numbers<[1], [0], [0], [1], [0, 0, 1, 1], [], []>} : vector<32x32xf32>, vector<32x32xf32>, vector<32x32xf32> -> vector<32x32xf32>
    %cst_69 = arith.constant dense<0.000000e+00> : vector<32x32xf32>
    %93 = tpu.matmul %1, %92, %cst_69 {dimension_numbers = #tpu.dot_dimension_numbers<[1], [0], [0], [1], [0, 0, 1, 1], [], []>} : vector<32x32xf32>, vector<32x32xf32>, vector<32x32xf32> -> vector<32x32xf32>
    %cst_70 = arith.constant 2.000000e+00 : f32
    %94 = vector.broadcast %cst_70 : f32 to vector<32x32xf32>
    %95 = arith.mulf %94, %93 : vector<32x32xf32>
    %96 = arith.subf %95, %80 : vector<32x32xf32>
    %cst_71 = arith.constant dense<0.000000e+00> : vector<32x32xf32>
    %97 = tpu.matmul %3, %92, %cst_71 {dimension_numbers = #tpu.dot_dimension_numbers<[1], [0], [0], [1], [0, 0, 1, 1], [], []>} : vector<32x32xf32>, vector<32x32xf32>, vector<32x32xf32> -> vector<32x32xf32>
    %cst_72 = arith.constant dense<0.000000e+00> : vector<32x32xf32>
    %98 = tpu.matmul %3, %97, %cst_72 {dimension_numbers = #tpu.dot_dimension_numbers<[1], [0], [0], [1], [0, 0, 1, 1], [], []>} : vector<32x32xf32>, vector<32x32xf32>, vector<32x32xf32> -> vector<32x32xf32>
    %cst_73 = arith.constant 2.000000e+00 : f32
    %99 = vector.broadcast %cst_73 : f32 to vector<32x32xf32>
    %100 = arith.mulf %99, %98 : vector<32x32xf32>
    %101 = arith.subf %100, %92 : vector<32x32xf32>
    %102 = tpu.concatenate %80, %92, %96, %97, %101 in 1 : vector<32x32xf32>, vector<32x32xf32>, vector<32x32xf32>, vector<32x32xf32>, vector<32x32xf32> -> vector<32x160xf32>
    %cst_74 = arith.constant dense<0.000000e+00> : vector<32x64xf32>
    %103 = tpu.matmul %91, %73, %cst_74 {dimension_numbers = #tpu.dot_dimension_numbers<[1], [0], [0], [1], [0, 0, 1, 1], [], []>} : vector<32x160xf32>, vector<160x64xf32>, vector<32x64xf32> -> vector<32x64xf32>
    %cst_75 = arith.constant dense<0.000000e+00> : vector<32x64xf32>
    %104 = tpu.matmul %102, %74, %cst_75 {dimension_numbers = #tpu.dot_dimension_numbers<[1], [0], [0], [1], [0, 0, 1, 1], [], []>} : vector<32x160xf32>, vector<160x64xf32>, vector<32x64xf32> -> vector<32x64xf32>
    %105 = arith.addf %103, %104 : vector<32x64xf32>
    %106 = vector.broadcast %75 : vector<1x64xf32> to vector<32x64xf32>
    %107 = arith.addf %105, %106 : vector<32x64xf32>
    %108 = arith.negf %107 : vector<32x64xf32>
    %109 = math.exp %108 : vector<32x64xf32>
    %cst_76 = arith.constant 1.000000e+00 : f32
    %110 = vector.broadcast %cst_76 : f32 to vector<32x64xf32>
    %111 = arith.addf %110, %109 : vector<32x64xf32>
    %112 = arith.divf %110, %111 : vector<32x64xf32>
    %113 = vector.extract_strided_slice %112 {offsets = [0, 0], sizes = [32, 32], strides = [1, 1]} : vector<32x64xf32> to vector<32x32xf32>
    %114 = vector.extract_strided_slice %112 {offsets = [0, 32], sizes = [32, 32], strides = [1, 1]} : vector<32x64xf32> to vector<32x32xf32>
    %115 = arith.mulf %113, %80 : vector<32x32xf32>
    %cst_77 = arith.constant dense<0.000000e+00> : vector<32x32xf32>
    %116 = tpu.matmul %1, %115, %cst_77 {dimension_numbers = #tpu.dot_dimension_numbers<[1], [0], [0], [1], [0, 0, 1, 1], [], []>} : vector<32x32xf32>, vector<32x32xf32>, vector<32x32xf32> -> vector<32x32xf32>
    %cst_78 = arith.constant dense<0.000000e+00> : vector<32x32xf32>
    %117 = tpu.matmul %1, %116, %cst_78 {dimension_numbers = #tpu.dot_dimension_numbers<[1], [0], [0], [1], [0, 0, 1, 1], [], []>} : vector<32x32xf32>, vector<32x32xf32>, vector<32x32xf32> -> vector<32x32xf32>
    %cst_79 = arith.constant 2.000000e+00 : f32
    %118 = vector.broadcast %cst_79 : f32 to vector<32x32xf32>
    %119 = arith.mulf %118, %117 : vector<32x32xf32>
    %120 = arith.subf %119, %115 : vector<32x32xf32>
    %cst_80 = arith.constant dense<0.000000e+00> : vector<32x32xf32>
    %121 = tpu.matmul %3, %116, %cst_80 {dimension_numbers = #tpu.dot_dimension_numbers<[1], [0], [0], [1], [0, 0, 1, 1], [], []>} : vector<32x32xf32>, vector<32x32xf32>, vector<32x32xf32> -> vector<32x32xf32>
    %cst_81 = arith.constant dense<0.000000e+00> : vector<32x32xf32>
    %122 = tpu.matmul %3, %121, %cst_81 {dimension_numbers = #tpu.dot_dimension_numbers<[1], [0], [0], [1], [0, 0, 1, 1], [], []>} : vector<32x32xf32>, vector<32x32xf32>, vector<32x32xf32> -> vector<32x32xf32>
    %cst_82 = arith.constant 2.000000e+00 : f32
    %123 = vector.broadcast %cst_82 : f32 to vector<32x32xf32>
    %124 = arith.mulf %123, %122 : vector<32x32xf32>
    %125 = arith.subf %124, %116 : vector<32x32xf32>
    %126 = tpu.concatenate %115, %116, %120, %121, %125 in 1 : vector<32x32xf32>, vector<32x32xf32>, vector<32x32xf32>, vector<32x32xf32>, vector<32x32xf32> -> vector<32x160xf32>
    %cst_83 = arith.constant dense<0.000000e+00> : vector<32x32xf32>
    %127 = tpu.matmul %91, %76, %cst_83 {dimension_numbers = #tpu.dot_dimension_numbers<[1], [0], [0], [1], [0, 0, 1, 1], [], []>} : vector<32x160xf32>, vector<160x32xf32>, vector<32x32xf32> -> vector<32x32xf32>
    %cst_84 = arith.constant dense<0.000000e+00> : vector<32x32xf32>
    %128 = tpu.matmul %126, %77, %cst_84 {dimension_numbers = #tpu.dot_dimension_numbers<[1], [0], [0], [1], [0, 0, 1, 1], [], []>} : vector<32x160xf32>, vector<160x32xf32>, vector<32x32xf32> -> vector<32x32xf32>
    %129 = arith.addf %127, %128 : vector<32x32xf32>
    %130 = vector.broadcast %78 : vector<1x32xf32> to vector<32x32xf32>
    %131 = arith.addf %129, %130 : vector<32x32xf32>
    %132 = math.tanh %131 : vector<32x32xf32>
    %133 = arith.mulf %114, %80 : vector<32x32xf32>
    %cst_85 = arith.constant 1.000000e+00 : f32
    %134 = vector.broadcast %cst_85 : f32 to vector<32x32xf32>
    %135 = arith.subf %134, %114 : vector<32x32xf32>
    %136 = arith.mulf %135, %132 : vector<32x32xf32>
    %137 = arith.addf %133, %136 : vector<32x32xf32>
    %c1_86 = arith.constant 1 : index
    %c0_87 = arith.constant 0 : index
    %c0_88 = arith.constant 0 : index
    %138 = vector.load %arg18[%c1_86, %c0_87, %c0_88] : memref<2x32x32xf32, #tpu.memory_space<vmem>>, vector<1x32x32xf32>
    %139 = vector.shape_cast %138 : vector<1x32x32xf32> to vector<32x32xf32>
    %140 = vector.shape_cast %137 : vector<32x32xf32> to vector<1x32x32xf32>
    tpu.vector_store %arg18[%c1_86, %c0_87, %c0_88], %140 {strides = array<i32>} : memref<2x32x32xf32, #tpu.memory_space<vmem>>, vector<1x32x32xf32>,
    %c0_89 = arith.constant 0 : index
    %c0_90 = arith.constant 0 : index
    %141 = vector.load %arg15[%c0_89, %c0_90] : memref<32x4xf32, #tpu.memory_space<vmem>>, vector<32x4xf32>
    %cst_91 = arith.constant dense<0.000000e+00> : vector<32x4xf32>
    %142 = tpu.matmul %137, %141, %cst_91 {dimension_numbers = #tpu.dot_dimension_numbers<[1], [0], [0], [1], [0, 0, 1, 1], [], []>} : vector<32x32xf32>, vector<32x4xf32>, vector<32x4xf32> -> vector<32x4xf32>
    %c0_92 = arith.constant 0 : index
    %c0_93 = arith.constant 0 : index
    %143 = vector.load %arg16[%c0_92, %c0_93] : memref<1x4xf32, #tpu.memory_space<vmem>>, vector<1x4xf32>
    %144 = vector.broadcast %143 : vector<1x4xf32> to vector<32x4xf32>
    %145 = arith.addf %142, %144 : vector<32x4xf32>
    %c0_94 = arith.constant 0 : index
    %c0_95 = arith.constant 0 : index
    %146 = vector.load %arg17[%c0_94, %c0_95] : memref<32x4xf32, #tpu.memory_space<vmem>>, vector<32x4xf32>
    tpu.vector_store %arg17[%c0_94, %c0_95], %145 {strides = array<i32>} : memref<32x4xf32, #tpu.memory_space<vmem>>, vector<32x4xf32>,
    return
  }
}

</mosaic_0001>

<bundles_post_ra>
// kernel: decoder_forward.1
= control target key start
LH: loop header
LB: loop body
LE: loop exit
PB: predicated region body
PF: predicated region fallthrough
CT: control target
= control target key end

     0   :  { %vm123_vm0 = vcmask 261120   ;;  %s2597_s30 = smov 4   ;;  %s2598_s21 = smov 8   ;;  %vm641_vm1 = vcmask 1043456   ;;  %vm4154_vm2 = vcmask 31744   ;;  %vm354_vm3 = vcmask 97280   ;;  %s4132_s0 = inlined_call_operand.vmem [shape: f32[32,4], index: 0, kind: input, shape index: {}]   ;;  %s4133_s2 = inlined_call_operand.vmem [shape: f32[2,32,32], index: 2, kind: input, shape index: {}]   ;;  %s4134_s1 = inlined_call_operand.vmem [shape: f32[2,32,32], index: 1, kind: input, shape index: {}]   ;;  %s4135_s4 = inlined_call_operand.vmem [shape: f32[160,64], index: 4, kind: input, shape index: {}]   ;;  %s4136_s3 = inlined_call_operand.vmem [shape: f32[20,64], index: 3, kind: input, shape index: {}]   ;;  %s4137_s5 = inlined_call_operand.vmem [shape: f32[1,64], index: 5, kind: input, shape index: {}]   ;;  %s4138_s6 = inlined_call_operand.vmem [shape: f32[20,32], index: 6, kind: input, shape index: {}]   ;;  %s4139_s7 = inlined_call_operand.vmem [shape: f32[160,32], index: 7, kind: input, shape index: {}]   ;;  %s4140_s8 = inlined_call_operand.vmem [shape: f32[1,32], index: 8, kind: input, shape index: {}]   ;;  %s4141_s18 = inlined_call_operand.vmem [shape: f32[2,32,32], index: 18, kind: output, shape index: {1}]   ;;  %s4142_s10 = inlined_call_operand.vmem [shape: f32[160,64], index: 10, kind: input, shape index: {}]   ;;  %s4143_s9 = inlined_call_operand.vmem [shape: f32[160,64], index: 9, kind: input, shape index: {}]   ;;  %s4144_s11 = inlined_call_operand.vmem [shape: f32[1,64], index: 11, kind: input, shape index: {}]   ;;  %s4145_s12 = inlined_call_operand.vmem [shape: f32[160,32], index: 12, kind: input, shape index: {}]   ;;  %s4146_s13 = inlined_call_operand.vmem [shape: f32[160,32], index: 13, kind: input, shape index: {}]   ;;  %s4147_s14 = inlined_call_operand.vmem [shape: f32[1,32], index: 14, kind: input, shape index: {}]   ;;  %s4148_s16 = inlined_call_operand.vmem [shape: f32[1,4], index: 16, kind: input, shape index: {}]   ;;  %s4149_s15 = inlined_call_operand.vmem [shape: f32[32,4], index: 15, kind: input, shape index: {}]   ;;  %s4150_s17 = inlined_call_operand.vmem [shape: f32[32,4], index: 17, kind: output, shape index: {0}]  }
   0x1   :  { %4155 = sst [smem:[#allocation2_spill]] %s4132_s0  ;;  %s2599_s22 = smov 12   ;;  %vm349_vm4 = vcmask 64512   ;;  %vm628_vm5 = vcmask 162816   ;;  %vm359_vm6 = vcmask 130048   ;;  %vm548_vm7 = vcmask 523264  }
   0x2   :  { %4156 = sst [smem:[#allocation3_spill]] %s4133_s2  ;;  %s2600_s24 = smov 32   ;;  %vm553_vm8 = vcmask 785408  }
   0x3   :  { %4157 = sst [smem:[#allocation4_spill]] %s4134_s1  ;;  %s2601_s25 = smov 16  }
   0x4   :  { %s4158_s29 = sld [smem:[#allocation2_spill]]  ;;  %s2602_s26 = smov 96  }
   0x5   :  { %s4159_s23 = sld [smem:[#allocation3_spill]]  ;;  %s2603_s27 = smov 64  }
   0x6   :  { %s4160_s1 = sld [smem:[#allocation4_spill]] }
   0xa   :  { %v2702_v0 = vld [vmem:[%s4158_s29 + $0x18] sm:$0xff]  ;;  %v2707_v1 = vld [vmem:[%s4158_s29 + $0x10] sm:$0xff]  ;;  %v2714_v2 = vld [vmem:[%s4158_s29 + $0x8] sm:$0xff] }
   0xb   :  { %2443 = vmatpush.msra.mxu3 %v2702_v0  ;;  %148 = vmatpush.msra.mxu0 %v2702_v0  ;;  %v2721_v3 = vld [vmem:[%s4158_s29] sm:$0xff]  ;;  %v2727_v4 = vld [vmem:[%s4159_s23 + $0x8] sm:$0xff]  ;;  %v2744_v6 = vld [vmem:[%s4159_s23 + $0x10] sm:$0xff] }
   0xc   :  { %v2733_v5 = vld [vmem:[%s4159_s23] sm:$0xff]  ;;  %v2751_v7 = vld [vmem:[%s4159_s23 + $0x18] sm:$0xff]  ;;  %v2783_v12 = vld [vmem:[%s4159_s23 + $0x28] sm:$0xff] }
   0xd   :  { %2444 = vmatpush.msra.mxu3 %v2707_v1  ;;  %149 = vmatpush.msra.mxu0 %v2707_v1  ;;  %v2798_v13 = vld [vmem:[%s4159_s23 + $0x20] sm:$0xff]  ;;  %v2803_v14 = vld [vmem:[%s4160_s1 + $0x18] sm:$0xff]  ;;  %v2809_v15 = vld [vmem:[%s4159_s23 + $0x30] sm:$0xff] }
   0xe   :  { %v2816_v16 = vld [vmem:[%s4160_s1 + $0x10] sm:$0xff]  ;;  %v2826_v17 = vld [vmem:[%s4160_s1 + $0x8] sm:$0xff]  ;;  %v2832_v18 = vld [vmem:[%s4160_s1] sm:$0xff] }
   0xf   :  { %2445 = vmatpush.msra.mxu3 %v2714_v2  ;;  %150 = vmatpush.msra.mxu0 %v2714_v2  ;;  %v2839_v19 = vld [vmem:[%s4159_s23 + $0x38] sm:$0xff] }
  0x11   :  { %2446 = vmatpush.msra.mxu3 %v2721_v3  ;;  %151 = vmatpush.msra.mxu0 %v2721_v3 }
  0x12   :  { %2294 = vmatmul.msk.f32.vlgmr.msra.gmra.mxu3 %vm123_vm0, %v2727_v4  ;;  %2293 = vmatmul.msk.f32.vlgmr.msra.gmra.mxu0 %vm123_vm0, %v2733_v5 }
  0x1a   :  { %2295 = vmatmul.msk.f32.gmra.mxu3 %vm123_vm0, %v2744_v6 }
  0x22   :  { %2296 = vmatmul.msk.f32.gmra.mxu3 %vm123_vm0, %v2751_v7 }
  0x8f   :  { %v2755_v8 = vpop.f32.mrf.mxu0 }
  0x90   :  { %284 = vrot.lane.b32.xlu0 %v2755_v8, %s2597_s30 }
  0x95   :  { %v2759_v9 = vpop.f32.mrf.mxu3 }
  0x96   :  { %286 = vrot.lane.b32.xlu1 %v2759_v9, %s2597_s30 }
  0x9d   :  { %v2763_v10 = vpop.f32.mrf.mxu3 }
  0x9e   :  { %288 = vrot.lane.b32.xlu2 %v2763_v10, %s2597_s30 }
  0xa5   :  { %v2767_v11 = vpop.f32.mrf.mxu3 }
  0xa6   :  { %177 = vmatpush.msrb.mxu0 %v2767_v11  ;;  %2447 = vmatpush.msra.mxu1 %v2767_v11 }
  0xa7   :  { %2451 = vmatpush.msra.mxu2 %v2767_v11 }
  0xa8   :  { %178 = vmatpush.msrb.mxu0 %v2763_v10  ;;  %2448 = vmatpush.msra.mxu1 %v2763_v10 }
  0xa9   :  { %2452 = vmatpush.msra.mxu2 %v2763_v10 }
  0xaa   :  { %179 = vmatpush.msrb.mxu0 %v2759_v9  ;;  %2449 = vmatpush.msra.mxu1 %v2759_v9 }
  0xab   :  { %2453 = vmatpush.msra.mxu2 %v2759_v9 }
  0xac   :  { %180 = vmatpush.msrb.mxu0 %v2755_v8  ;;  %2450 = vmatpush.msra.mxu1 %v2755_v8 }
  0xad   :  { %2454 = vmatpush.msra.mxu2 %v2755_v8  ;;  %2297 = vmatmul.msk.f32.vlgmr.msrb.gmra.mxu0 %vm123_vm0, %v2733_v5 }
  0xae   :  { %2298 = vmatmul.msk.f32.vlgmr.msra.gmra.mxu1 %vm123_vm0, %v2727_v4  ;;  %226 = vmatpush.msra.mxu0 %v2767_v11 }
  0xaf   :  { %2302 = vmatmul.msk.f32.vlgmr.msra.gmra.mxu2 %vm123_vm0, %v2783_v12 }
  0xb0   :  { %227 = vmatpush.msra.mxu0 %v2763_v10 }
  0xb2   :  { %228 = vmatpush.msra.mxu0 %v2759_v9 }
  0xb4   :  { %229 = vmatpush.msra.mxu0 %v2755_v8 }
  0xb5   :  { %2301 = vmatmul.msk.f32.vlgmr.msra.gmra.mxu0 %vm123_vm0, %v2798_v13 }
  0xb6   :  { %376 = vmatpush.msrb.mxu0 %v2803_v14  ;;  %2299 = vmatmul.msk.f32.gmra.mxu1 %vm123_vm0, %v2744_v6 }
  0xb7   :  { %2303 = vmatmul.msk.f32.gmra.mxu2 %vm123_vm0, %v2809_v15 }
  0xb8   :  { %377 = vmatpush.msrb.mxu0 %v2816_v16 }
  0xba   :  { %378 = vmatpush.msrb.mxu0 %v2826_v17 }
  0xbc   :  { %379 = vmatpush.msrb.mxu0 %v2832_v18 }
  0xbd   :  { %2309 = vmatmul.msk.f32.vlgmr.msrb.gmra.mxu0 %vm123_vm0, %v2733_v5 }
  0xbe   :  { %2300 = vmatmul.msk.f32.gmra.mxu1 %vm123_vm0, %v2751_v7 }
  0xbf   :  { %2304 = vmatmul.msk.f32.gmra.mxu2 %vm123_vm0, %v2839_v19 }
  0xc5   :  { %2310 = vmatmul.msk.f32.gmra.mxu0 %vm123_vm0, %v2727_v4 }
  0xcd   :  { %2311 = vmatmul.msk.f32.gmra.mxu0 %vm123_vm0, %v2744_v6 }
  0xd5   :  { %2312 = vmatmul.msk.f32.gmra.mxu0 %vm123_vm0, %v2751_v7 }
 0x12a   :  { %v182_v20 = vpop.f32.mrf.mxu0 }
 0x12b   :  { %v194_v21 = vmul.f32 2.0, %v182_v20  ;;  %v185_v22 = vpop.f32.mrf.mxu1 }
 0x12c   :  { %v195_v23 = vmul.f32 2.0, %v185_v22 }
 0x12d   :  { %v198_v24 = vsub.f32 %v194_v21, %v2721_v3 }
 0x12e   :  { %v199_v25 = vsub.f32 %v195_v23, %v2714_v2 }
 0x12f   :  { %300 = vrot.lane.b32.xlu0 %v198_v24, %s2598_s21  ;;  %v73_v24 = vld [vmem:[%s4136_s3 + $0x10] sm:$0xf] }
 0x130   :  { %302 = vrot.lane.b32.xlu2 %v199_v25, %s2598_s21  ;;  %v88_v25 = vld [vmem:[%s4135_s4 + $0x70] sm:$0xff] }
 0x132   :  { %v234_v26 = vpop.f32.mrf.mxu2  ;;  %v231_v27 = vpop.f32.mrf.mxu0 }
 0x133   :  { %316 = vrot.lane.b32.xlu1 %v231_v27, %s2599_s22  ;;  %v188_v28 = vpop.f32.mrf.mxu1 }
 0x134   :  { %v196_v29 = vmul.f32 2.0, %v188_v28  ;;  %v71_v28 = vld [vmem:[%s4136_s3] sm:$0xff] }
 0x136   :  { %v200_v32 = vsub.f32 %v196_v29, %v2707_v1  ;;  %v86_v29 = vld [vmem:[%s4135_s4 + $0x60] sm:$0xff] }
 0x137   :  { %318 = vrot.lane.b32.xlu0 %v234_v26, %s2599_s22 }
 0x13a   :  { %v237_v30 = vpop.f32.mrf.mxu2  ;;  %v2859_v31 = vpop.f32.mrf.mxu0 }
 0x13b   :  { %320 = vrot.lane.b32.xlu1 %v237_v30, %s2599_s22  ;;  %v191_v39 = vpop.f32.mrf.mxu1 }
 0x13c   :  { %v197_v46 = vmul.f32 2.0, %v191_v39  ;;  %v81_v39 = vld [vmem:[%s4135_s4 + $0x38] sm:$0xff] }
 0x13e   :  { %v201_v48 = vsub.f32 %v197_v46, %v2702_v0  ;;  %v77_v46 = vld [vmem:[%s4135_s4 + $0x18] sm:$0xff] }
 0x13f   :  { %304 = vrot.lane.b32.xlu0 %v200_v32, %s2598_s21  ;;  %v84_v32 = vld [vmem:[%s4135_s4 + $0x50] sm:$0xff] }
 0x142   :  { %v2864_v33 = vpop.f32.mrf.mxu2  ;;  %v2866_v34 = vpop.f32.mrf.mxu0 }
 0x143   :  { %255 = vmatpush.msrb.mxu3 %v2864_v33  ;;  %v2462_v35 = vpack.i.bf16 %v2866_v34, %v2859_v31 }
 0x145   :  { %256 = vmatpush.msrb.mxu3 %v237_v30  ;;  %2463 = vrot.lane.b32.xlu2 %v2462_v35, %s2600_s24  ;;  %v85_v30 = vld [vmem:[%s4135_s4 + $0x58] sm:$0xff]  ;;  %v83_v35 = vld [vmem:[%s4135_s4 + $0x48] sm:$0xff] }
 0x147   :  { %257 = vmatpush.msrb.mxu3 %v234_v26  ;;  %v72_v26 = vld [vmem:[%s4136_s3 + $0x8] sm:$0xff] }
 0x149   :  { %258 = vmatpush.msrb.mxu3 %v231_v27  ;;  %v87_v27 = vld [vmem:[%s4135_s4 + $0x68] sm:$0xff] }
 0x14a   :  { %2305 = vmatmul.msk.f32.vlgmr.msrb.gmra.mxu3 %vm123_vm0, %v2798_v13  ;;  %v2874_v36 = vpop.f32.mrf.mxu0 }
 0x14b   :  { %504 = vrot.lane.b32.xlu0 %v2874_v36, %s2600_s24 }
 0x152   :  { %2306 = vmatmul.msk.f32.gmra.mxu3 %vm123_vm0, %v2783_v12  ;;  %v2880_v37 = vpop.f32.mrf.mxu0 }
 0x153   :  { %405 = vmatpush.msrb.mxu1 %v2880_v37  ;;  %442 = vmatpush.msrb.mxu2 %v2880_v37 }
 0x155   :  { %406 = vmatpush.msrb.mxu1 %v2874_v36  ;;  %443 = vmatpush.msrb.mxu2 %v2874_v36 }
 0x157   :  { %407 = vmatpush.msrb.mxu1 %v2866_v34  ;;  %444 = vmatpush.msrb.mxu2 %v2866_v34 }
 0x159   :  { %408 = vmatpush.msrb.mxu1 %v2859_v31  ;;  %445 = vmatpush.msrb.mxu2 %v2859_v31 }
 0x15a   :  { %2307 = vmatmul.msk.f32.gmra.mxu3 %vm123_vm0, %v2809_v15  ;;  %2313 = vmatmul.msk.f32.vlgmr.msrb.gmra.mxu1 %vm123_vm0, %v2733_v5 }
 0x15b   :  { %2317 = vmatmul.msk.f32.vlgmr.msrb.gmra.mxu2 %vm123_vm0, %v2798_v13 }
 0x15c   :  { %2329 = vmatpush.msk.msra.mxu2 %vm641_vm1, %v73_v24 }
 0x15e   :  { %659 = vmatpush.msra.mxu2 %v72_v26 }
 0x160   :  { %660 = vmatpush.msra.mxu2 %v71_v28 }
 0x162   :  { %2308 = vmatmul.msk.f32.gmra.mxu3 %vm123_vm0, %v2839_v19  ;;  %2314 = vmatmul.msk.f32.gmra.mxu1 %vm123_vm0, %v2727_v4 }
 0x163   :  { %2318 = vmatmul.msk.f32.gmra.mxu2 %vm123_vm0, %v2783_v12 }
 0x16a   :  { %2315 = vmatmul.msk.f32.gmra.mxu1 %vm123_vm0, %v2744_v6 }
 0x16b   :  { %2319 = vmatmul.msk.f32.gmra.mxu2 %vm123_vm0, %v2809_v15 }
 0x172   :  { %2316 = vmatmul.msk.f32.gmra.mxu1 %vm123_vm0, %v2751_v7 }
 0x173   :  { %2320 = vmatmul.msk.f32.gmra.mxu2 %vm123_vm0, %v2839_v19 }
 0x1cd   :  { %v260_v38 = vpop.f32.mrf.mxu3 }
 0x1ce   :  { %v272_v40 = vmul.f32 2.0, %v260_v38  ;;  %v82_v38 = vld [vmem:[%s4135_s4 + $0x40] sm:$0xff] }
 0x1d0   :  { %v276_v41 = vsub.f32 %v272_v40, %v2755_v8  ;;  %v285_v40 = vpop.permute.xlu0 %284 }
 0x1d2   :  { %332 = vrot.lane.b32.xlu1 %v276_v41, %s2601_s25  ;;  %v80_v41 = vld [vmem:[%s4135_s4 + $0x30] sm:$0xff] }
 0x1d5   :  { %v263_v42 = vpop.f32.mrf.mxu3 }
 0x1d6   :  { %v273_v43 = vmul.f32 2.0, %v263_v42  ;;  %v289_v42 = vpop.permute.xlu2 %288 }
 0x1d7   :  { %v410_v44 = vpop.f32.mrf.mxu1 }
 0x1d8   :  { %v277_v45 = vsub.f32 %v273_v43, %v2759_v9  ;;  %v422_v49 = vmul.f32 2.0, %v410_v44  ;;  %v79_v44 = vld [vmem:[%s4135_s4 + $0x28] sm:$0xff] }
 0x1da   :  { %334 = vrot.lane.b32.xlu1 %v277_v45, %s2601_s25  ;;  %v426_v55 = vsub.f32 %v422_v49, %v2832_v18  ;;  %v78_v45 = vld [vmem:[%s4135_s4 + $0x20] sm:$0xff] }
 0x1dd   :  { %v266_v47 = vpop.f32.mrf.mxu3 }
 0x1de   :  { %v274_v50 = vmul.f32 2.0, %v266_v47  ;;  %v447_v51 = vpop.f32.mrf.mxu2  ;;  %v301_v47 = vpop.permute.xlu0 %300 }
 0x1df   :  { %v413_v52 = vpop.f32.mrf.mxu1  ;;  %v303_v49 = vpop.permute.xlu2 %302 }
 0x1e0   :  { %v278_v53 = vsub.f32 %v274_v50, %v2763_v10  ;;  %v423_v54 = vmul.f32 2.0, %v413_v52  ;;  %v74_v52 = vld [vmem:[%s4135_s4] sm:$0xff] }
 0x1e2   :  { %v427_v56 = vsub.f32 %v423_v54, %v2826_v17  ;;  %336 = vrot.lane.b32.xlu2 %v278_v53, %s2601_s25  ;;  %306 = vrot.lane.b32.xlu1 %v201_v48, %s2598_s21  ;;  %v76_v48 = vld [vmem:[%s4135_s4 + $0x10] sm:$0xff]  ;;  %v345_v54 = vsel %vm4154_vm2, %v2721_v3, %v285_v40 }
 0x1e4   :  { %v2467_v58 = vpack.i.bf16 %v427_v56, %v426_v55  ;;  %v350_v55 = vsel %vm349_vm4, %v345_v54, %v301_v47 }
 0x1e5   :  { %v269_v8 = vpop.f32.mrf.mxu3 }
 0x1e6   :  { %v450_v57 = vpop.f32.mrf.mxu2  ;;  %v275_v9 = vmul.f32 2.0, %v269_v8  ;;  %v319_v53 = vpop.permute.xlu0 %318 }
 0x1e7   :  { %v2472_v59 = vpack.i.bf16 %v450_v57, %v447_v51  ;;  %v416_v60 = vpop.f32.mrf.mxu1  ;;  %v2464_v56 = vpop.permute.xlu2 %2463 }
 0x1e8   :  { %v424_v61 = vmul.f32 2.0, %v416_v60  ;;  %v279_v20 = vsub.f32 %v275_v9, %v2767_v11  ;;  %v2465_v24 = vunpack.i.l.bf16 %v2464_v56 }
 0x1e9   :  { %2473 = vrot.lane.b32.xlu0 %v2472_v59, %s2602_s26 }
 0x1ea   :  { %v428_v62 = vsub.f32 %v424_v61, %v2816_v16  ;;  %2468 = vrot.lane.b32.xlu2 %v2467_v58, %s2603_s27 }
 0x1ec   :  { %520 = vrot.lane.b32.xlu1 %v428_v62, %s2603_s27 }
 0x1ee   :  { %v453_v63 = vpop.f32.mrf.mxu2  ;;  %v305_v61 = vpop.permute.xlu0 %304 }
 0x1ef   :  { %v419_v21 = vpop.f32.mrf.mxu1 }
 0x1f0   :  { %v425_v22 = vmul.f32 2.0, %v419_v21 }
 0x1f1   :  { %290 = vrot.lane.b32.xlu0 %v2767_v11, %s2597_s30  ;;  %v89_v11 = vld [vmem:[%s4135_s4 + $0x78] sm:$0xff] }
 0x1f2   :  { %322 = vrot.lane.b32.xlu2 %v2864_v33, %s2599_s22  ;;  %v429_v23 = vsub.f32 %v425_v22, %v2803_v14  ;;  %570 = vmatpush.msra.mxu0 %v89_v11  ;;  %v287_v33 = vpop.permute.xlu1 %286  ;;  %v93_v11 = vld [vmem:[%s4135_s4 + $0x98] sm:$0xff] }
 0x1f3   :  { %v346_v60 = vsel %vm4154_vm2, %v2714_v2, %v287_v33  ;;  %611 = vmatpush.msra.mxu1 %v93_v11 }
 0x1f4   :  { %506 = vrot.lane.b32.xlu1 %v2880_v37, %s2600_s24  ;;  %571 = vmatpush.msra.mxu0 %v88_v25  ;;  %v351_v3 = vsel %vm349_vm4, %v346_v60, %v303_v49 }
 0x1f5   :  { %v356_v62 = vsel %vm354_vm3, %v351_v3, %v319_v53 }
 0x1f6   :  { %v456_v10 = vpop.f32.mrf.mxu2  ;;  %572 = vmatpush.msra.mxu0 %v87_v27  ;;  %v505_v21 = vpop.permute.xlu0 %504  ;;  %v544_v27 = vsel %vm123_vm0, %v2832_v18, %v2465_v24 }
 0x1f7   :  { %471 = vmatpush.msra.mxu3 %v456_v10  ;;  %v546_v49 = vsel %vm123_vm0, %v2816_v16, %v505_v21 }
 0x1f8   :  { %573 = vmatpush.msra.mxu0 %v86_v29 }
 0x1f9   :  { %472 = vmatpush.msra.mxu3 %v453_v63  ;;  %338 = vrot.lane.b32.xlu0 %v279_v20, %s2601_s25 }
 0x1fa   :  { %536 = vrot.lane.b32.xlu2 %v453_v63, %s2602_s26  ;;  %574 = vmatpush.msra.mxu0 %v85_v30  ;;  %v317_v43 = vpop.permute.xlu1 %316 }
 0x1fb   :  { %473 = vmatpush.msra.mxu3 %v450_v57  ;;  %v355_v57 = vsel %vm354_vm3, %v350_v55, %v317_v43  ;;  %v90_v43 = vld [vmem:[%s4135_s4 + $0x80] sm:$0xff] }
 0x1fc   :  { %575 = vmatpush.msra.mxu0 %v84_v32  ;;  %v2466_v32 = vunpack.i.h.bf16 %v2464_v56 }
 0x1fd   :  { %474 = vmatpush.msra.mxu3 %v447_v51  ;;  %v75_v51 = vld [vmem:[%s4135_s4 + $0x8] sm:$0xff] }
 0x1fe   :  { %2321 = vmatmul.msk.f32.vlgmr.msra.gmra.mxu3 %vm123_vm0, %v2798_v13  ;;  %576 = vmatpush.msra.mxu0 %v83_v35 }
 0x200   :  { %577 = vmatpush.msra.mxu0 %v82_v38  ;;  %v92_v38 = vld [vmem:[%s4135_s4 + $0x90] sm:$0xff] }
 0x201   :  { %538 = vrot.lane.b32.xlu0 %v456_v10, %s2602_s26  ;;  %v347_v10 = vsel %vm4154_vm2, %v2707_v1, %v289_v42  ;;  %612 = vmatpush.msra.mxu1 %v92_v38  ;;  %v545_v42 = vsel %vm123_vm0, %v2826_v17, %v2466_v32 }
 0x202   :  { %522 = vrot.lane.b32.xlu2 %v429_v23, %s2603_s27  ;;  %578 = vmatpush.msra.mxu0 %v81_v39  ;;  %v321_v50 = vpop.permute.xlu1 %320  ;;  %v352_v20 = vsel %vm349_vm4, %v347_v10, %v305_v61 }
 0x203   :  { %v357_v2 = vsel %vm354_vm3, %v352_v20, %v321_v50 }
 0x204   :  { %579 = vmatpush.msra.mxu0 %v80_v41  ;;  %v91_v41 = vld [vmem:[%s4135_s4 + $0x88] sm:$0xff] }
 0x205   :  { %613 = vmatpush.msra.mxu1 %v91_v41 }
 0x206   :  { %2322 = vmatmul.msk.f32.gmra.mxu3 %vm123_vm0, %v2783_v12  ;;  %580 = vmatpush.msra.mxu0 %v79_v44 }
 0x207   :  { %614 = vmatpush.msra.mxu1 %v90_v43 }
 0x208   :  { %581 = vmatpush.msra.mxu0 %v78_v45 }
 0x20a   :  { %582 = vmatpush.msra.mxu0 %v77_v46 }
 0x20c   :  { %583 = vmatpush.msra.mxu0 %v76_v48 }
 0x20e   :  { %2323 = vmatmul.msk.f32.gmra.mxu3 %vm123_vm0, %v2809_v15  ;;  %584 = vmatpush.msra.mxu0 %v75_v51 }
 0x210   :  { %585 = vmatpush.msra.mxu0 %v74_v52 }
 0x216   :  { %2324 = vmatmul.msk.f32.gmra.mxu3 %vm123_vm0, %v2839_v19 }
 0x23c   :  { %v337_v63 = vpop.permute.xlu2 %336 }
 0x23d   :  { %v3025_v22 = vsel %vm359_vm6, %v357_v2, %v337_v63 }
 0x244   :  { %v333_v58 = vpop.permute.xlu1 %332  ;;  %v2469_v23 = vpop.permute.xlu2 %2468 }
 0x245   :  { %v3007_v59 = vsel %vm359_vm6, %v355_v57, %v333_v58  ;;  %v2470_v25 = vunpack.i.l.bf16 %v2469_v23  ;;  %v2471_v35 = vunpack.i.h.bf16 %v2469_v23 }
 0x246   :  { %2330 = vmatmul.msk.f32.vlgmr.msra.gmra.mxu2 %vm628_vm5, %v3007_v59 }
 0x247   :  { %v549_v29 = vsel %vm548_vm7, %v544_v27, %v2470_v25  ;;  %v550_v46 = vsel %vm548_vm7, %v545_v42, %v2471_v35 }
 0x24c   :  { %v335_v8 = vpop.permute.xlu1 %334  ;;  %v323_v33 = vpop.permute.xlu2 %322 }
 0x24d   :  { %v3016_v9 = vsel %vm359_vm6, %v356_v62, %v335_v8 }
 0x24e   :  { %2331 = vmatmul.msk.f32.gmra.mxu2 %vm628_vm5, %v3016_v9 }
 0x254   :  { %v307_v1 = vpop.permute.xlu1 %306  ;;  %v537_v50 = vpop.permute.xlu2 %536 }
 0x256   :  { %2332 = vmatmul.msk.f32.gmra.mxu2 %vm628_vm5, %v3025_v22 }
 0x25b   :  { %v2474_v26 = vpop.permute.xlu0 %2473 }
 0x25c   :  { %v2475_v28 = vunpack.i.l.bf16 %v2474_v26  ;;  %v2476_v39 = vunpack.i.h.bf16 %v2474_v26  ;;  %v523_v57 = vpop.permute.xlu2 %522 }
 0x25e   :  { %v554_v30 = vsel %vm553_vm8, %v549_v29, %v2475_v28  ;;  %v521_v44 = vpop.permute.xlu1 %520  ;;  %v555_v47 = vsel %vm553_vm8, %v550_v46, %v2476_v39  ;;  %v2532_v29 = vld [vmem:[%s4137_s5] ss:$0 sm:$0xff] }
 0x25f   :  { %586 = vmatmul.f32.vlgmr.msra.gmra.mxu0 %v554_v30  ;;  %v551_v51 = vsel %vm548_vm7, %v546_v49, %v521_v44 }
 0x263   :  { %v291_v40 = vpop.permute.xlu0 %290 }
 0x264   :  { %v348_v45 = vsel %vm4154_vm2, %v2702_v0, %v291_v40  ;;  %v556_v0 = vsel %vm553_vm8, %v551_v51, %v537_v50 }
 0x265   :  { %v353_v48 = vsel %vm349_vm4, %v348_v45, %v307_v1 }
 0x266   :  { %v358_v53 = vsel %vm354_vm3, %v353_v48, %v323_v33  ;;  %v507_v55 = vpop.permute.xlu1 %506 }
 0x267   :  { %589 = vmatmul.f32.gmra.mxu0 %v555_v47  ;;  %v547_v56 = vsel %vm123_vm0, %v2803_v14, %v507_v55 }
 0x268   :  { %v552_v60 = vsel %vm548_vm7, %v547_v56, %v523_v57 }
 0x26b   :  { %v339_v52 = vpop.permute.xlu0 %338 }
 0x26c   :  { %v3057_v54 = vsel %vm359_vm6, %v358_v53, %v339_v52 }
 0x26d   :  { %2333 = vmatmul.msk.f32.gmra.mxu2 %vm628_vm5, %v3057_v54 }
 0x26f   :  { %592 = vmatmul.f32.gmra.mxu0 %v556_v0 }
 0x273   :  { %v539_v58 = vpop.permute.xlu0 %538 }
 0x274   :  { %v557_v3 = vsel %vm553_vm8, %v552_v60, %v539_v58 }
 0x277   :  { %595 = vmatmul.f32.gmra.mxu0 %v557_v3 }
 0x281   :  { %v476_v61 = vpop.f32.mrf.mxu3 }
 0x282   :  { %v488_v62 = vmul.f32 2.0, %v476_v61 }
 0x284   :  { %v492_v63 = vsub.f32 %v488_v62, %v2859_v31 }
 0x286   :  { %2325 = vmatmul.msk.f32.vlgmr.msra.gmra.mxu1 %vm123_vm0, %v492_v63 }
 0x289   :  { %v479_v8 = vpop.f32.mrf.mxu3 }
 0x28a   :  { %v489_v10 = vmul.f32 2.0, %v479_v8 }
 0x28c   :  { %v493_v20 = vsub.f32 %v489_v10, %v2866_v34 }
 0x28e   :  { %2326 = vmatmul.msk.f32.gmra.mxu1 %vm123_vm0, %v493_v20 }
 0x291   :  { %v482_v21 = vpop.f32.mrf.mxu3 }
 0x292   :  { %v490_v2 = vmul.f32 2.0, %v482_v21 }
 0x294   :  { %v494_v23 = vsub.f32 %v490_v2, %v2874_v36 }
 0x296   :  { %2327 = vmatmul.msk.f32.gmra.mxu1 %vm123_vm0, %v494_v23 }
 0x299   :  { %v485_v11 = vpop.f32.mrf.mxu3 }
 0x29a   :  { %v491_v24 = vmul.f32 2.0, %v485_v11 }
 0x29c   :  { %v495_v25 = vsub.f32 %v491_v24, %v2880_v37 }
 0x29e   :  { %2328 = vmatmul.msk.f32.gmra.mxu1 %vm123_vm0, %v495_v25 }
 0x2c9   :  { %v662_v1 = vpop.f32.mrf.mxu2 }
 0x2d1   :  { %v665_v30 = vpop.f32.mrf.mxu2 }
 0x2d9   :  { %v668_v43 = vpop.f32.mrf.mxu2 }
 0x2dc   :  { %v587_v31 = vpop.f32.mrf.mxu0 }
 0x2e4   :  { %v590_v28 = vpop.f32.mrf.mxu0 }
 0x2ec   :  { %v593_v39 = vpop.f32.mrf.mxu0 }
 0x2f0   :  { %v671_v52 = vpop.f32.mrf.mxu2 }
 0x2f4   :  { %v596_v48 = vpop.f32.mrf.mxu0 }
 0x303   :  { %v616_v26 = vpop.f32.mrf.mxu1 }
 0x304   :  { %v617_v27 = vadd.f32 %v616_v26, %v587_v31 }
 0x306   :  { %v663_v34 = vadd.f32 %v662_v1, %v617_v27 }
 0x308   :  { %v677_v33 = vadd.f32 %v2532_v29, %v663_v34 }
 0x30a   :  { %v2334_v37 = vmul.f32 -1.442695, %v677_v33 }
 0x30b   :  { %v619_v36 = vpop.f32.mrf.mxu1 }
 0x30c   :  { %v620_v32 = vadd.f32 %v619_v36, %v590_v28  ;;  %2537 = vpow2.f32 %v2334_v37 }
 0x30e   :  { %v666_v35 = vadd.f32 %v665_v30, %v620_v32 }
 0x310   :  { %v678_v38 = vadd.f32 %v2532_v29, %v666_v35 }
 0x312   :  { %v2335_v40 = vmul.f32 -1.442695, %v678_v38  ;;  %v2538_v47 = vpop.eup %2537 }
 0x313   :  { %v622_v41 = vpop.f32.mrf.mxu1  ;;  %v3077_v53 = vadd.f32 1.0, %v2538_v47 }
 0x314   :  { %v623_v42 = vadd.f32 %v622_v41, %v593_v39  ;;  %2539 = vpow2.f32 %v2335_v40 }
 0x315   :  { %vm702_vm9 = vweird.f32 %v3077_v53 }
 0x316   :  { %v669_v44 = vadd.f32 %v668_v43, %v623_v42 }
 0x318   :  { %v679_v45 = vadd.f32 %v2532_v29, %v669_v44 }
 0x31a   :  { %v2336_v46 = vmul.f32 -1.442695, %v679_v45  ;;  %v2540_v50 = vpop.eup %2539  ;;  %v706_v45 = vand.u32 2147483647, %v3077_v53 }
 0x31b   :  { %v625_v49 = vpop.f32.mrf.mxu1  ;;  %v3079_v55 = vadd.f32 1.0, %v2540_v50 }
 0x31c   :  { %2541 = vpow2.f32 %v2336_v46  ;;  %v626_v51 = vadd.f32 %v625_v49, %v596_v48  ;;  %v708_v46 = vand.u32 2147483648, %v3077_v53 }
 0x31d   :  { %2543 = vrcp.f32 %v3077_v53  ;;  %vm717_vm15 = vweird.f32 %v3079_v55  ;;  %v721_v38 = vand.u32 2147483647, %v3079_v55  ;;  %v723_v39 = vand.u32 2147483648, %v3079_v55 }
 0x31e   :  { %v672_v0 = vadd.f32 %v671_v52, %v626_v51  ;;  %2545 = vrcp.f32 %v3079_v55 }
 0x31f   :  { %v724_v51 = vor.u32 1.1754944e-38, %v723_v39 }
 0x320   :  { %v680_v56 = vadd.f32 %v2532_v29, %v672_v0 }
 0x322   :  { %v2542_v57 = vpop.eup %2541  ;;  %v2337_v58 = vmul.f32 -1.442695, %v680_v56  ;;  %v709_v56 = vor.u32 1.1754944e-38, %v708_v46 }
 0x323   :  { %v695_v60 = vadd.f32 1.0, %v2542_v57  ;;  %v3083_v3 = vpop.eup %2543 }
 0x324   :  { %2547 = vpow2.f32 %v2337_v58  ;;  %v2546_v61 = vpop.eup %2545  ;;  %v698_v21 = vmul.f32 %v3083_v3, %v3077_v53  ;;  %vm703_vm3 = vweird.f32 %v3083_v3 }
 0x325   :  { %2549 = vrcp.f32 %v695_v60  ;;  %v713_v20 = vmul.f32 %v2546_v61, %v3079_v55  ;;  %vm718_vm11 = vweird.f32 %v2546_v61  ;;  %vm732_vm12 = vweird.f32 %v695_v60 }
 0x326   :  { %v699_v11 = vsub.f32 1.0, %v698_v21  ;;  %v736_v29 = vand.u32 2147483647, %v695_v60  ;;  %v738_v30 = vand.u32 2147483648, %v695_v60  ;;  %vm3101_vm6 = vmor %vm717_vm15, %vm718_vm11 }
 0x327   :  { %v714_v23 = vsub.f32 1.0, %v713_v20  ;;  %vm704_vm11 = vmor %vm702_vm9, %vm703_vm3  ;;  %v95_v20 = vld [vmem:[%s4138_s6] sm:$0xff] }
 0x328   :  { %v700_v26 = vmul.f32 %v3083_v3, %v699_v11  ;;  %v739_v44 = vor.u32 1.1754944e-38, %v738_v30  ;;  %vm737_vm2 = vcmp.eq.f32.partialorder %v736_v29, 8.507059e+37  ;;  %v102_v29 = vld [vmem:[%s4139_s7 + $0x20] sm:$0xff]  ;;  %v101_v30 = vld [vmem:[%s4139_s7 + $0x18] sm:$0xff] }
 0x329   :  { %v715_v1 = vmul.f32 %v2546_v61, %v714_v23 }
 0x32a   :  { %v2548_v62 = vpop.eup %2547  ;;  %v701_v42 = vadd.f32 %v3083_v3, %v700_v26  ;;  %v112_v26 = vld [vmem:[%s4139_s7 + $0x70] sm:$0xff] }
 0x32b   :  { %v2550_v63 = vpop.eup %2549  ;;  %v696_v8 = vadd.f32 1.0, %v2548_v62  ;;  %v716_v33 = vadd.f32 %v2546_v61, %v715_v1 }
 0x32c   :  { %v728_v10 = vmul.f32 %v2550_v63, %v695_v60  ;;  %vm733_vm10 = vweird.f32 %v2550_v63  ;;  %v705_v0 = vsel %vm704_vm11, %v3083_v3, %v701_v42 }
 0x32d   :  { %2551 = vrcp.f32 %v696_v8  ;;  %v753_v34 = vand.u32 2147483648, %v696_v8  ;;  %v751_v32 = vand.u32 2147483647, %v696_v8  ;;  %vm3090_vm14 = vmor %vm732_vm12, %vm733_vm10  ;;  %vm747_vm4 = vweird.f32 %v696_v8 }
 0x32e   :  { %v729_v2 = vsub.f32 1.0, %v728_v10  ;;  %v720_v48 = vsel %vm3101_vm6, %v2546_v61, %v716_v33  ;;  %v96_v10 = vld [vmem:[%s4138_s6 + $0x8] sm:$0xff]  ;;  %v98_v33 = vld [vmem:[%s4139_s7] sm:$0xff] }
 0x32f   :  { %v754_v43 = vor.u32 1.1754944e-38, %v753_v34  ;;  %vm752_vm12 = vcmp.eq.f32.partialorder %v751_v32, 8.507059e+37  ;;  %v109_v34 = vld [vmem:[%s4139_s7 + $0x58] sm:$0xff]  ;;  %v99_v32 = vld [vmem:[%s4139_s7 + $0x8] sm:$0xff] }
 0x330   :  { %v730_v24 = vmul.f32 %v2550_v63, %v729_v2 }
 0x332   :  { %v731_v28 = vadd.f32 %v2550_v63, %v730_v24 }
 0x333   :  { %v2552_v25 = vpop.eup %2551 }
 0x334   :  { %v743_v31 = vmul.f32 %v2552_v25, %v696_v8  ;;  %vm748_vm13 = vweird.f32 %v2552_v25  ;;  %v735_v40 = vsel %vm3090_vm14, %v2550_v63, %v731_v28  ;;  %v97_v8 = vld [vmem:[%s4138_s6 + $0x10] sm:$0xf]  ;;  %v111_v28 = vld [vmem:[%s4139_s7 + $0x68] sm:$0xff] }
 0x335   :  { %vm749_vm10 = vmor %vm747_vm4, %vm748_vm13  ;;  %v3112_v50 = vsel %vm737_vm2, %v739_v44, %v735_v40  ;;  %vm722_vm13 = vcmp.eq.f32.partialorder %v721_v38, 8.507059e+37  ;;  %vm707_vm2 = vcmp.eq.f32.partialorder %v706_v45, 8.507059e+37 }
 0x336   :  { %v744_v27 = vsub.f32 1.0, %v743_v31  ;;  %v3123_v55 = vsel %vm722_vm13, %v724_v51, %v720_v48  ;;  %v3128_v57 = vmul.f32 %v3112_v50, %v2816_v16  ;;  %v3130_v58 = vsel %vm707_vm2, %v709_v56, %v705_v0  ;;  %v113_v31 = vld [vmem:[%s4139_s7 + $0x78] sm:$0xff]  ;;  %v116_v56 = vld [vmem:[%s4139_s7 + $0x90] sm:$0xff] }
 0x337   :  { %v3135_v53 = vmul.f32 %v3123_v55, %v2826_v17  ;;  %v3140_v60 = vmul.f32 %v3130_v58, %v2832_v18 }
 0x338   :  { %v745_v36 = vmul.f32 %v2552_v25, %v744_v27 }
 0x33a   :  { %v746_v37 = vadd.f32 %v2552_v25, %v745_v36  ;;  %v100_v36 = vld [vmem:[%s4139_s7 + $0x10] sm:$0xff] }
 0x33c   :  { %v750_v47 = vsel %vm749_vm10, %v2552_v25, %v746_v37 }
 0x33d   :  { %v3110_v49 = vsel %vm752_vm12, %v754_v43, %v750_v47  ;;  %v117_v43 = vld [vmem:[%s4139_s7 + $0x98] sm:$0xff] }
 0x33e   :  { %v3120_v52 = vmul.f32 %v3110_v49, %v2803_v14 }
 0x340   :  { %773 = vmatpush.msrb.mxu3 %v3120_v52 }
 0x342   :  { %774 = vmatpush.msrb.mxu3 %v3128_v57 }
 0x344   :  { %775 = vmatpush.msrb.mxu3 %v3135_v53 }
 0x346   :  { %776 = vmatpush.msrb.mxu3 %v3140_v60 }
 0x347   :  { %2338 = vmatmul.msk.f32.vlgmr.msrb.gmra.mxu3 %vm123_vm0, %v2733_v5 }
 0x348   :  { %965 = vmatpush.msra.mxu3 %v113_v31 }
 0x34a   :  { %966 = vmatpush.msra.mxu3 %v112_v26 }
 0x34c   :  { %967 = vmatpush.msra.mxu3 %v111_v28 }
 0x34f   :  { %2339 = vmatmul.msk.f32.gmra.mxu3 %vm123_vm0, %v2727_v4 }
 0x357   :  { %2340 = vmatmul.msk.f32.gmra.mxu3 %vm123_vm0, %v2744_v6 }
 0x35f   :  { %2341 = vmatmul.msk.f32.gmra.mxu3 %vm123_vm0, %v2751_v7 }
 0x3ca   :  { %v3151_v3 = vpop.f32.mrf.mxu3 }
 0x3d2   :  { %v3153_v61 = vpop.f32.mrf.mxu3 }
 0x3d3   :  { %v2477_v18 = vpack.i.bf16 %v3153_v61, %v3151_v3 }
 0x3d5   :  { %2478 = vrot.lane.b32.xlu1 %v2477_v18, %s2600_s24 }
 0x3da   :  { %v3158_v62 = vpop.f32.mrf.mxu3 }
 0x3e2   :  { %v3160_v63 = vpop.f32.mrf.mxu3 }
 0x3e3   :  { %802 = vmatpush.msrb.mxu0 %v3160_v63  ;;  %839 = vmatpush.msrb.mxu1 %v3160_v63 }
 0x3e5   :  { %803 = vmatpush.msrb.mxu0 %v3158_v62  ;;  %840 = vmatpush.msrb.mxu1 %v3158_v62 }
 0x3e7   :  { %804 = vmatpush.msrb.mxu0 %v3153_v61  ;;  %841 = vmatpush.msrb.mxu1 %v3153_v61 }
 0x3e9   :  { %805 = vmatpush.msrb.mxu0 %v3151_v3  ;;  %842 = vmatpush.msrb.mxu1 %v3151_v3 }
 0x3ea   :  { %2342 = vmatmul.msk.f32.vlgmr.msrb.gmra.mxu0 %vm123_vm0, %v2733_v5  ;;  %2346 = vmatmul.msk.f32.vlgmr.msrb.gmra.mxu1 %vm123_vm0, %v2798_v13 }
 0x3eb   :  { %2358 = vmatpush.msk.msra.mxu1 %vm641_vm1, %v97_v8  ;;  %1006 = vmatpush.msra.mxu0 %v117_v43 }
 0x3ed   :  { %1040 = vmatpush.msra.mxu1 %v96_v10  ;;  %1007 = vmatpush.msra.mxu0 %v116_v56 }
 0x3ef   :  { %1041 = vmatpush.msra.mxu1 %v95_v20 }
 0x3f2   :  { %2343 = vmatmul.msk.f32.gmra.mxu0 %vm123_vm0, %v2727_v4  ;;  %2347 = vmatmul.msk.f32.gmra.mxu1 %vm123_vm0, %v2783_v12 }
 0x3fa   :  { %2344 = vmatmul.msk.f32.gmra.mxu0 %vm123_vm0, %v2744_v6  ;;  %2348 = vmatmul.msk.f32.gmra.mxu1 %vm123_vm0, %v2809_v15 }
 0x402   :  { %2345 = vmatmul.msk.f32.gmra.mxu0 %vm123_vm0, %v2751_v7  ;;  %2349 = vmatmul.msk.f32.gmra.mxu1 %vm123_vm0, %v2839_v19 }
 0x40a   :  { %2359 = vmatmul.msk.f32.vlgmr.msra.gmra.mxu1 %vm628_vm5, %v3007_v59 }
 0x412   :  { %2360 = vmatmul.msk.f32.gmra.mxu1 %vm628_vm5, %v3016_v9 }
 0x41a   :  { %2361 = vmatmul.msk.f32.gmra.mxu1 %vm628_vm5, %v3025_v22 }
 0x422   :  { %2362 = vmatmul.msk.f32.gmra.mxu1 %vm628_vm5, %v3057_v54 }
 0x447   :  { %v2479_v35 = vpop.permute.xlu1 %2478 }
 0x448   :  { %v2480_v38 = vunpack.i.l.bf16 %v2479_v35  ;;  %v2481_v44 = vunpack.i.h.bf16 %v2479_v35 }
 0x44a   :  { %v941_v37 = vsel %vm123_vm0, %v3140_v60, %v2480_v38  ;;  %v942_v46 = vsel %vm123_vm0, %v3135_v53, %v2481_v44 }
 0x467   :  { %v807_v4 = vpop.f32.mrf.mxu0  ;;  %v844_v5 = vpop.f32.mrf.mxu1 }
 0x468   :  { %v819_v6 = vmul.f32 2.0, %v807_v4  ;;  %929 = vrot.lane.b32.xlu0 %v844_v5, %s2602_s26 }
 0x46a   :  { %v823_v7 = vsub.f32 %v819_v6, %v3140_v60  ;;  %v115_v60 = vld [vmem:[%s4139_s7 + $0x88] sm:$0xff] }
 0x46b   :  { %1008 = vmatpush.msra.mxu0 %v115_v60 }
 0x46c   :  { %913 = vrot.lane.b32.xlu2 %v823_v7, %s2603_s27 }
 0x46f   :  { %v810_v21 = vpop.f32.mrf.mxu0  ;;  %v847_v59 = vpop.f32.mrf.mxu1 }
 0x470   :  { %v820_v2 = vmul.f32 2.0, %v810_v21  ;;  %901 = vrot.lane.b32.xlu0 %v3158_v62, %s2600_s24 }
 0x472   :  { %v824_v9 = vsub.f32 %v820_v2, %v3135_v53  ;;  %v114_v53 = vld [vmem:[%s4139_s7 + $0x80] sm:$0xff] }
 0x473   :  { %1009 = vmatpush.msra.mxu0 %v114_v53 }
 0x474   :  { %931 = vrot.lane.b32.xlu2 %v847_v59, %s2602_s26  ;;  %915 = vrot.lane.b32.xlu1 %v824_v9, %s2603_s27 }
 0x477   :  { %v813_v22 = vpop.f32.mrf.mxu0  ;;  %v850_v54 = vpop.f32.mrf.mxu1 }
 0x478   :  { %v821_v23 = vmul.f32 2.0, %v813_v22  ;;  %903 = vrot.lane.b32.xlu0 %v3160_v63, %s2600_s24 }
 0x47a   :  { %v825_v11 = vsub.f32 %v821_v23, %v3128_v57 }
 0x47c   :  { %933 = vrot.lane.b32.xlu2 %v850_v54, %s2602_s26  ;;  %917 = vrot.lane.b32.xlu1 %v825_v11, %s2603_s27 }
 0x47f   :  { %v816_v24 = vpop.f32.mrf.mxu0  ;;  %v853_v25 = vpop.f32.mrf.mxu1 }
 0x480   :  { %v822_v1 = vmul.f32 2.0, %v816_v24  ;;  %1076 = vrot.lane.b32.xlu0 %v2803_v14, %s2600_s24  ;;  %868 = vmatpush.msrb.mxu2 %v853_v25  ;;  %v110_v14 = vld [vmem:[%s4139_s7 + $0x60] sm:$0xff] }
 0x481   :  { %968 = vmatpush.msra.mxu3 %v110_v14 }
 0x482   :  { %v826_v27 = vsub.f32 %v822_v1, %v3120_v52  ;;  %869 = vmatpush.msrb.mxu2 %v850_v54 }
 0x483   :  { %969 = vmatpush.msra.mxu3 %v109_v34 }
 0x484   :  { %870 = vmatpush.msrb.mxu2 %v847_v59  ;;  %935 = vrot.lane.b32.xlu2 %v853_v25, %s2602_s26 }
 0x485   :  { %919 = vrot.lane.b32.xlu1 %v826_v27, %s2603_s27 }
 0x486   :  { %871 = vmatpush.msrb.mxu2 %v844_v5 }
 0x487   :  { %2350 = vmatmul.msk.f32.vlgmr.msrb.gmra.mxu2 %vm123_vm0, %v2798_v13  ;;  %v108_v13 = vld [vmem:[%s4139_s7 + $0x50] sm:$0xff] }
 0x488   :  { %970 = vmatpush.msra.mxu3 %v108_v13 }
 0x48c   :  { %1074 = vrot.lane.b32.xlu2 %v2816_v16, %s2600_s24  ;;  %v107_v16 = vld [vmem:[%s4139_s7 + $0x48] sm:$0xff] }
 0x48d   :  { %1072 = vrot.lane.b32.xlu1 %v2826_v17, %s2600_s24  ;;  %v106_v17 = vld [vmem:[%s4139_s7 + $0x40] sm:$0xff]  ;;  %971 = vmatpush.msra.mxu3 %v107_v16 }
 0x48e   :  { %v2533_v16 = vld [vmem:[%s4140_s8] ss:$0 sm:$0xff] }
 0x48f   :  { %2351 = vmatmul.msk.f32.gmra.mxu2 %vm123_vm0, %v2783_v12  ;;  %v105_v12 = vld [vmem:[%s4139_s7 + $0x38] sm:$0xff]  ;;  %972 = vmatpush.msra.mxu3 %v106_v17 }
 0x491   :  { %973 = vmatpush.msra.mxu3 %v105_v12 }
 0x497   :  { %2352 = vmatmul.msk.f32.gmra.mxu2 %vm123_vm0, %v2809_v15  ;;  %v104_v15 = vld [vmem:[%s4139_s7 + $0x30] sm:$0xff] }
 0x498   :  { %974 = vmatpush.msra.mxu3 %v104_v15 }
 0x49f   :  { %2353 = vmatmul.msk.f32.gmra.mxu2 %vm123_vm0, %v2839_v19  ;;  %v103_v19 = vld [vmem:[%s4139_s7 + $0x28] sm:$0xff] }
 0x4a0   :  { %975 = vmatpush.msra.mxu3 %v103_v19 }
 0x4a2   :  { %976 = vmatpush.msra.mxu3 %v102_v29 }
 0x4a4   :  { %977 = vmatpush.msra.mxu3 %v101_v30 }
 0x4a6   :  { %978 = vmatpush.msra.mxu3 %v100_v36 }
 0x4a8   :  { %979 = vmatpush.msra.mxu3 %v99_v32 }
 0x4aa   :  { %980 = vmatpush.msra.mxu3 %v98_v33 }
 0x4c6   :  { %v914_v39 = vpop.permute.xlu2 %913 }
 0x4c7   :  { %v945_v40 = vsel %vm548_vm7, %v941_v37, %v914_v39 }
 0x4ce   :  { %v932_v45 = vpop.permute.xlu2 %931 }
 0x4d6   :  { %v934_v18 = vpop.permute.xlu2 %933 }
 0x4da   :  { %v930_v41 = vpop.permute.xlu0 %929 }
 0x4db   :  { %v949_v42 = vsel %vm553_vm8, %v945_v40, %v930_v41 }
 0x4dc   :  { %981 = vmatmul.f32.vlgmr.msra.gmra.mxu3 %v949_v42 }
 0x4de   :  { %v936_v21 = vpop.permute.xlu2 %935 }
 0x4e2   :  { %v902_v0 = vpop.permute.xlu0 %901 }
 0x4e3   :  { %v943_v8 = vsel %vm123_vm0, %v3128_v57, %v902_v0 }
 0x4e6   :  { %v916_v47 = vpop.permute.xlu1 %915 }
 0x4e7   :  { %v946_v48 = vsel %vm548_vm7, %v942_v46, %v916_v47  ;;  %v1075_v47 = vpop.permute.xlu2 %1074 }
 0x4e8   :  { %v950_v51 = vsel %vm553_vm8, %v946_v48, %v932_v45  ;;  %v2585_v45 = vld [vmem:[%s4160_s1] sm:$0xff] }
 0x4e9   :  { %984 = vmatmul.f32.gmra.mxu3 %v950_v51  ;;  %v1087_v51 = vsub.f32 1.0, %v3123_v55 }
 0x4ea   :  { %v904_v5 = vpop.permute.xlu0 %903 }
 0x4eb   :  { %v944_v6 = vsel %vm123_vm0, %v3120_v52, %v904_v5 }
 0x4ee   :  { %v918_v10 = vpop.permute.xlu1 %917 }
 0x4ef   :  { %v947_v20 = vsel %vm548_vm7, %v943_v8, %v918_v10  ;;  %v1088_v8 = vsub.f32 1.0, %v3112_v50 }
 0x4f0   :  { %v951_v4 = vsel %vm553_vm8, %v947_v20, %v934_v18  ;;  %v1084_v20 = vmul.f32 %v1075_v47, %v3112_v50 }
 0x4f1   :  { %987 = vmatmul.f32.gmra.mxu3 %v951_v4 }
 0x4f2   :  { %v1077_v18 = vpop.permute.xlu0 %1076 }
 0x4f7   :  { %v920_v7 = vpop.permute.xlu1 %919 }
 0x4f8   :  { %v948_v59 = vsel %vm548_vm7, %v944_v6, %v920_v7  ;;  %v1089_v6 = vsub.f32 1.0, %v3110_v49 }
 0x4f9   :  { %v952_v2 = vsel %vm553_vm8, %v948_v59, %v936_v21  ;;  %v1085_v21 = vmul.f32 %v1077_v18, %v3110_v49 }
 0x4fa   :  { %990 = vmatmul.f32.gmra.mxu3 %v952_v2 }
 0x4ff   :  { %v1073_v48 = vpop.permute.xlu1 %1072 }
 0x500   :  { %v1083_v56 = vmul.f32 %v1073_v48, %v3123_v55 }
 0x50a   :  { %v873_v9 = vpop.f32.mrf.mxu2 }
 0x50b   :  { %v885_v57 = vmul.f32 2.0, %v873_v9  ;;  %v1086_v9 = vsub.f32 1.0, %v3130_v58 }
 0x50d   :  { %v889_v22 = vsub.f32 %v885_v57, %v3151_v3  ;;  %v1043_v3 = vpop.f32.mrf.mxu1 }
 0x50f   :  { %2354 = vmatmul.msk.f32.vlgmr.msra.gmra.mxu0 %vm123_vm0, %v889_v22 }
 0x512   :  { %v876_v54 = vpop.f32.mrf.mxu2 }
 0x513   :  { %v886_v23 = vmul.f32 2.0, %v876_v54 }
 0x515   :  { %v890_v11 = vsub.f32 %v886_v23, %v3153_v61  ;;  %v1046_v34 = vpop.f32.mrf.mxu1 }
 0x517   :  { %2355 = vmatmul.msk.f32.gmra.mxu0 %vm123_vm0, %v890_v11 }
 0x51a   :  { %v879_v52 = vpop.f32.mrf.mxu2 }
 0x51b   :  { %v887_v24 = vmul.f32 2.0, %v879_v52  ;;  %v3375_v52 = vld [vmem:[%s4160_s1 + $0x38] sm:$0xff] }
 0x51d   :  { %v891_v25 = vsub.f32 %v887_v24, %v3158_v62  ;;  %v1049_v15 = vpop.f32.mrf.mxu1  ;;  %v3381_v24 = vld [vmem:[%s4159_s23] sm:$0xff] }
 0x51f   :  { %2356 = vmatmul.msk.f32.gmra.mxu0 %vm123_vm0, %v891_v25  ;;  %v3388_v25 = vld [vmem:[%s4160_s1 + $0x30] sm:$0xff] }
 0x522   :  { %v882_v31 = vpop.f32.mrf.mxu2 }
 0x523   :  { %v888_v1 = vmul.f32 2.0, %v882_v31  ;;  %v3394_v31 = vld [vmem:[%s4160_s1 + $0x28] sm:$0xff] }
 0x525   :  { %v892_v26 = vsub.f32 %v888_v1, %v3160_v63  ;;  %v1052_v38 = vpop.f32.mrf.mxu1  ;;  %v3400_v1 = vld [vmem:[%s4160_s1 + $0x20] sm:$0xff] }
 0x527   :  { %2357 = vmatmul.msk.f32.gmra.mxu0 %vm123_vm0, %v892_v26  ;;  %v3407_v26 = vld [vmem:[%s4159_s23 + $0x8] sm:$0xff] }
 0x55f   :  { %v982_v27 = vpop.f32.mrf.mxu3 }
 0x56c   :  { %v985_v14 = vpop.f32.mrf.mxu3 }
 0x574   :  { %v988_v12 = vpop.f32.mrf.mxu3 }
 0x57d   :  { %v991_v32 = vpop.f32.mrf.mxu3 }
 0x58c   :  { %v1011_v28 = vpop.f32.mrf.mxu0 }
 0x58d   :  { %v1012_v39 = vadd.f32 %v1011_v28, %v982_v27  ;;  %v3421_v27 = vld [vmem:[%s4159_s23 + $0x18] sm:$0xff] }
 0x58f   :  { %v1044_v42 = vadd.f32 %v1043_v3, %v1012_v39  ;;  %v3414_v3 = vld [vmem:[%s4159_s23 + $0x10] sm:$0xff] }
 0x591   :  { %v1058_v43 = vadd.f32 %v2533_v16, %v1044_v42 }
 0x594   :  { %v1014_v61 = vpop.f32.mrf.mxu0 }
 0x595   :  { %v1015_v13 = vadd.f32 %v1014_v61, %v985_v14 }
 0x597   :  { %v1047_v62 = vadd.f32 %v1046_v34, %v1015_v13  ;;  %v3454_v13 = vld [vmem:[%s4159_s23 + $0x20] sm:$0xff] }
 0x599   :  { %v1059_v17 = vadd.f32 %v2533_v16, %v1047_v62 }
 0x59b   :  { %2553 = vtanh.f32 %v1059_v17  ;;  %v3468_v17 = vld [vmem:[%s4159_s23 + $0x28] sm:$0xff] }
 0x59c   :  { %v1017_v19 = vpop.f32.mrf.mxu0 }
 0x59d   :  { %v1018_v63 = vadd.f32 %v1017_v19, %v988_v12  ;;  %v3482_v19 = vld [vmem:[%s4159_s23 + $0x30] sm:$0xff] }
 0x59f   :  { %v1050_v29 = vadd.f32 %v1049_v15, %v1018_v63 }
 0x5a1   :  { %v2554_v30 = vpop.eup %2553  ;;  %v1060_v36 = vadd.f32 %v2533_v16, %v1050_v29 }
 0x5a2   :  { %1096 = vrot.lane.b32.xlu2 %v2554_v30, %s2600_s24  ;;  %v3496_v30 = vld [vmem:[%s4159_s23 + $0x38] sm:$0xff] }
 0x5a3   :  { %2555 = vtanh.f32 %v1060_v36 }
 0x5a4   :  { %v1020_v33 = vpop.f32.mrf.mxu0 }
 0x5a5   :  { %v1021_v35 = vadd.f32 %v1020_v33, %v991_v32 }
 0x5a7   :  { %v1053_v37 = vadd.f32 %v1052_v38, %v1021_v35 }
 0x5a9   :  { %v2556_v40 = vpop.eup %2555  ;;  %v1061_v41 = vadd.f32 %v2533_v16, %v1053_v37 }
 0x5aa   :  { %1098 = vrot.lane.b32.xlu0 %v2556_v40, %s2600_s24 }
 0x5ab   :  { %2557 = vtanh.f32 %v1061_v41 }
 0x5ac   :  { %2559 = vtanh.f32 %v1058_v43 }
 0x5b1   :  { %v2558_v44 = vpop.eup %2557 }
 0x5b2   :  { %1070 = vrot.lane.b32.xlu0 %v2585_v45, %s2600_s24  ;;  %1100 = vrot.lane.b32.xlu1 %v2558_v44, %s2600_s24  ;;  %v2560_v46 = vpop.eup %2559 }
 0x5ba   :  { %1094 = vrot.lane.b32.xlu1 %v2560_v46, %s2600_s24 }
 0x5fc   :  { %v1097_v0 = vpop.permute.xlu2 %1096 }
 0x5fd   :  { %v1107_v60 = vmul.f32 %v1097_v0, %v1087_v51 }
 0x5ff   :  { %v1111_v53 = vadd.f32 %v1107_v60, %v1083_v56 }
 0x601   :  { %1120 = vrot.lane.b32.xlu1 %v1111_v53, %s2602_s26 }
 0x61c   :  { %v1099_v10 = vpop.permute.xlu0 %1098 }
 0x61d   :  { %v1108_v4 = vmul.f32 %v1099_v10, %v1088_v8 }
 0x61f   :  { %v1112_v5 = vadd.f32 %v1108_v4, %v1084_v20 }
 0x621   :  { %1122 = vrot.lane.b32.xlu0 %v1112_v5, %s2602_s26 }
 0x624   :  { %v1101_v7 = vpop.permute.xlu1 %1100  ;;  %v1071_v2 = vpop.permute.xlu0 %1070 }
 0x625   :  { %v1109_v55 = vmul.f32 %v1101_v7, %v1089_v6  ;;  %v1082_v22 = vmul.f32 %v1071_v2, %v3130_v58 }
 0x627   :  { %v1113_v59 = vadd.f32 %v1109_v55, %v1085_v21 }
 0x629   :  { %1124 = vrot.lane.b32.xlu2 %v1113_v59, %s2602_s26 }
 0x62c   :  { %v1095_v57 = vpop.permute.xlu1 %1094 }
 0x62d   :  { %v1106_v50 = vmul.f32 %v1095_v57, %v1086_v9 }
 0x62f   :  { %v1110_v54 = vadd.f32 %v1106_v50, %v1082_v22 }
 0x631   :  { %1118 = vrot.lane.b32.xlu2 %v1110_v54, %s2602_s26 }
 0x673   :  { %v3341_v23 = vpop.permute.xlu1 %1120 }
 0x674   :  { %1131 = vst.msk [vmem:[%s4141_s18 + $0x8] sm:$0xff] %vm123_vm0, %v3341_v23 }
 0x683   :  { %v3348_v49 = vpop.permute.xlu2 %1124 }
 0x684   :  { %1133 = vst.msk [vmem:[%s4141_s18 + $0x18] sm:$0xff] %vm123_vm0, %v3348_v49  ;;  %1233 = vmatpush.msra.mxu2 %v3348_v49 }
 0x68b   :  { %v3356_v58 = vpop.permute.xlu2 %1118 }
 0x68c   :  { %1130 = vst.msk [vmem:[%s4141_s18] sm:$0xff] %vm123_vm0, %v3356_v58 }
 0x693   :  { %v3363_v11 = vpop.permute.xlu0 %1122 }
 0x694   :  { %1132 = vst.msk [vmem:[%s4141_s18 + $0x10] sm:$0xff] %vm123_vm0, %v3363_v11  ;;  %1234 = vmatpush.msra.mxu2 %v3363_v11 }
 0x696   :  { %1235 = vmatpush.msra.mxu2 %v3341_v23 }
 0x698   :  { %1236 = vmatpush.msra.mxu2 %v3356_v58 }
 0x699   :  { %2367 = vmatmul.msk.f32.vlgmr.msra.gmra.mxu2 %vm123_vm0, %v3381_v24 }
 0x69a   :  { %1425 = vmatpush.msrb.mxu2 %v3375_v52 }
 0x69c   :  { %1426 = vmatpush.msrb.mxu2 %v3388_v25 }
 0x69e   :  { %1427 = vmatpush.msrb.mxu2 %v3394_v31 }
 0x6a0   :  { %1428 = vmatpush.msrb.mxu2 %v3400_v1 }
 0x6a1   :  { %2368 = vmatmul.msk.f32.gmra.mxu2 %vm123_vm0, %v3407_v26 }
 0x6a9   :  { %2369 = vmatmul.msk.f32.gmra.mxu2 %vm123_vm0, %v3414_v3 }
 0x6b1   :  { %2370 = vmatmul.msk.f32.gmra.mxu2 %vm123_vm0, %v3421_v27 }
 0x6b9   :  { %2383 = vmatmul.msk.f32.vlgmr.msrb.gmra.mxu2 %vm123_vm0, %v3381_v24 }
 0x6c1   :  { %2384 = vmatmul.msk.f32.gmra.mxu2 %vm123_vm0, %v3407_v26 }
 0x6c9   :  { %2385 = vmatmul.msk.f32.gmra.mxu2 %vm123_vm0, %v3414_v3 }
 0x6d1   :  { %2386 = vmatmul.msk.f32.gmra.mxu2 %vm123_vm0, %v3421_v27 }
 0x71c   :  { %v3433_v28 = vpop.f32.mrf.mxu2 }
 0x724   :  { %v3435_v14 = vpop.f32.mrf.mxu2 }
 0x72c   :  { %v3437_v34 = vpop.f32.mrf.mxu2 }
 0x734   :  { %v3439_v61 = vpop.f32.mrf.mxu2 }
 0x735   :  { %1262 = vmatpush.msrb.mxu3 %v3439_v61  ;;  %1299 = vmatpush.msrb.mxu0 %v3439_v61 }
 0x737   :  { %1263 = vmatpush.msrb.mxu3 %v3437_v34  ;;  %1300 = vmatpush.msrb.mxu0 %v3437_v34 }
 0x739   :  { %1264 = vmatpush.msrb.mxu3 %v3435_v14  ;;  %1301 = vmatpush.msrb.mxu0 %v3435_v14 }
 0x73b   :  { %1265 = vmatpush.msrb.mxu3 %v3433_v28  ;;  %1302 = vmatpush.msrb.mxu0 %v3433_v28 }
 0x73c   :  { %2371 = vmatmul.msk.f32.vlgmr.msrb.gmra.mxu3 %vm123_vm0, %v3381_v24  ;;  %2375 = vmatmul.msk.f32.vlgmr.msrb.gmra.mxu0 %vm123_vm0, %v3454_v13  ;;  %v3458_v16 = vpop.f32.mrf.mxu2 }
 0x73d   :  { %v2482_v62 = vpack.i.bf16 %v3433_v28, %v3458_v16 }
 0x73f   :  { %2483 = vrot.lane.b32.xlu0 %v2482_v62, %s2600_s24 }
 0x744   :  { %2372 = vmatmul.msk.f32.gmra.mxu3 %vm123_vm0, %v3407_v26  ;;  %2376 = vmatmul.msk.f32.gmra.mxu0 %vm123_vm0, %v3468_v17  ;;  %v3472_v12 = vpop.f32.mrf.mxu2 }
 0x745   :  { %v2487_v15 = vpack.i.bf16 %v3435_v14, %v3472_v12 }
 0x747   :  { %2488 = vrot.lane.b32.xlu0 %v2487_v15, %s2600_s24  ;;  %v1169_v15 = vld [vmem:[%s4142_s10 + $0x78] sm:$0xff] }
 0x748   :  { %1617 = vmatpush.msra.mxu2 %v1169_v15 }
 0x74c   :  { %2373 = vmatmul.msk.f32.gmra.mxu3 %vm123_vm0, %v3414_v3  ;;  %2377 = vmatmul.msk.f32.gmra.mxu0 %vm123_vm0, %v3482_v19  ;;  %v3486_v63 = vpop.f32.mrf.mxu2 }
 0x74d   :  { %v2492_v29 = vpack.i.bf16 %v3437_v34, %v3486_v63 }
 0x74f   :  { %2493 = vrot.lane.b32.xlu0 %v2492_v29, %s2600_s24  ;;  %v1149_v29 = vld [vmem:[%s4143_s9 + $0x78] sm:$0xff] }
 0x754   :  { %2374 = vmatmul.msk.f32.gmra.mxu3 %vm123_vm0, %v3421_v27  ;;  %2378 = vmatmul.msk.f32.gmra.mxu0 %vm123_vm0, %v3496_v30  ;;  %v3500_v36 = vpop.f32.mrf.mxu2 }
 0x755   :  { %1454 = vmatpush.msra.mxu3 %v3500_v36  ;;  %1491 = vmatpush.msra.mxu0 %v3500_v36 }
 0x757   :  { %1555 = vrot.lane.b32.xlu0 %v3500_v36, %s2600_s24  ;;  %1455 = vmatpush.msra.mxu3 %v3486_v63 }
 0x758   :  { %1492 = vmatpush.msra.mxu0 %v3486_v63 }
 0x759   :  { %1456 = vmatpush.msra.mxu3 %v3472_v12 }
 0x75a   :  { %1493 = vmatpush.msra.mxu0 %v3472_v12 }
 0x75b   :  { %1457 = vmatpush.msra.mxu3 %v3458_v16 }
 0x75c   :  { %1494 = vmatpush.msra.mxu0 %v3458_v16  ;;  %2387 = vmatmul.msk.f32.vlgmr.msra.gmra.mxu3 %vm123_vm0, %v3381_v24 }
 0x75d   :  { %2391 = vmatmul.msk.f32.vlgmr.msra.gmra.mxu0 %vm123_vm0, %v3454_v13 }
 0x75e   :  { %1687 = vmatpush.msrb.mxu0 %v1149_v29 }
 0x75f   :  { %1363 = vrot.lane.b32.xlu0 %v3439_v61, %s2600_s24 }
 0x764   :  { %2388 = vmatmul.msk.f32.gmra.mxu3 %vm123_vm0, %v3407_v26 }
 0x765   :  { %2392 = vmatmul.msk.f32.gmra.mxu0 %vm123_vm0, %v3468_v17 }
 0x76c   :  { %2389 = vmatmul.msk.f32.gmra.mxu3 %vm123_vm0, %v3414_v3 }
 0x76d   :  { %2393 = vmatmul.msk.f32.gmra.mxu0 %vm123_vm0, %v3482_v19 }
 0x774   :  { %2390 = vmatmul.msk.f32.gmra.mxu3 %vm123_vm0, %v3421_v27 }
 0x775   :  { %2394 = vmatmul.msk.f32.gmra.mxu0 %vm123_vm0, %v3496_v30 }
 0x7b9   :  { %v1304_v32 = vpop.f32.mrf.mxu0 }
 0x7bf   :  { %v1267_v33 = vpop.f32.mrf.mxu3 }
 0x7c0   :  { %v1279_v44 = vmul.f32 2.0, %v1267_v33  ;;  %v1148_v33 = vld [vmem:[%s4143_s9 + $0x70] sm:$0xff] }
 0x7c1   :  { %v1307_v35 = vpop.f32.mrf.mxu0  ;;  %1688 = vmatpush.msrb.mxu0 %v1148_v33  ;;  %v1172_v33 = vld [vmem:[%s4142_s10 + $0x90] sm:$0xff] }
 0x7c2   :  { %v1283_v47 = vsub.f32 %v1279_v44, %v3356_v58  ;;  %v1163_v44 = vld [vmem:[%s4142_s10 + $0x48] sm:$0xff] }
 0x7c7   :  { %v1270_v38 = vpop.f32.mrf.mxu3 }
 0x7c8   :  { %v1280_v60 = vmul.f32 2.0, %v1270_v38  ;;  %v1147_v38 = vld [vmem:[%s4143_s9 + $0x68] sm:$0xff] }
 0x7c9   :  { %v1310_v39 = vpop.f32.mrf.mxu0  ;;  %1689 = vmatpush.msrb.mxu0 %v1147_v38 }
 0x7ca   :  { %v1284_v8 = vsub.f32 %v1280_v60, %v3341_v23  ;;  %v1159_v60 = vld [vmem:[%s4142_s10 + $0x28] sm:$0xff] }
 0x7cf   :  { %v1273_v37 = vpop.f32.mrf.mxu3 }
 0x7d0   :  { %v1281_v5 = vmul.f32 2.0, %v1273_v37  ;;  %v1146_v37 = vld [vmem:[%s4143_s9 + $0x60] sm:$0xff] }
 0x7d1   :  { %v1313_v40 = vpop.f32.mrf.mxu0  ;;  %1690 = vmatpush.msrb.mxu0 %v1146_v37  ;;  %v1171_v37 = vld [vmem:[%s4142_s10 + $0x88] sm:$0xff] }
 0x7d2   :  { %1328 = vmatpush.msrb.mxu1 %v1313_v40  ;;  %v1285_v21 = vsub.f32 %v1281_v5, %v3363_v11  ;;  %v1152_v5 = vld [vmem:[%s4143_s9 + $0x90] sm:$0xff] }
 0x7d4   :  { %1329 = vmatpush.msrb.mxu1 %v1310_v39 }
 0x7d6   :  { %1330 = vmatpush.msrb.mxu1 %v1307_v35 }
 0x7d7   :  { %v1276_v41 = vpop.f32.mrf.mxu3 }
 0x7d8   :  { %1331 = vmatpush.msrb.mxu1 %v1304_v32  ;;  %v1282_v54 = vmul.f32 2.0, %v1276_v41  ;;  %v1145_v41 = vld [vmem:[%s4143_s9 + $0x58] sm:$0xff] }
 0x7d9   :  { %2379 = vmatmul.msk.f32.vlgmr.msrb.gmra.mxu1 %vm123_vm0, %v3454_v13  ;;  %1691 = vmatpush.msrb.mxu0 %v1145_v41 }
 0x7da   :  { %v1496_v42 = vpop.f32.mrf.mxu0  ;;  %v1286_v62 = vsub.f32 %v1282_v54, %v3348_v49 }
 0x7db   :  { %v2497_v43 = vpack.i.bf16 %v1304_v32, %v1496_v42  ;;  %v1168_v32 = vld [vmem:[%s4142_s10 + $0x70] sm:$0xff] }
 0x7dc   :  { %1618 = vmatpush.msra.mxu2 %v1168_v32 }
 0x7dd   :  { %2498 = vrot.lane.b32.xlu2 %v2497_v43, %s2602_s26  ;;  %v1144_v43 = vld [vmem:[%s4143_s9 + $0x50] sm:$0xff] }
 0x7de   :  { %1692 = vmatpush.msrb.mxu0 %v1144_v43 }
 0x7df   :  { %v1459_v45 = vpop.f32.mrf.mxu3 }
 0x7e0   :  { %v1471_v46 = vmul.f32 2.0, %v1459_v45  ;;  %v1143_v45 = vld [vmem:[%s4143_s9 + $0x48] sm:$0xff] }
 0x7e1   :  { %2380 = vmatmul.msk.f32.gmra.mxu1 %vm123_vm0, %v3468_v17  ;;  %1693 = vmatpush.msrb.mxu0 %v1143_v45 }
 0x7e2   :  { %v1475_v48 = vsub.f32 %v1471_v46, %v3400_v1  ;;  %v1499_v51 = vpop.f32.mrf.mxu0  ;;  %v1162_v46 = vld [vmem:[%s4142_s10 + $0x40] sm:$0xff] }
 0x7e3   :  { %v2502_v0 = vpack.i.bf16 %v1307_v35, %v1499_v51  ;;  %v1167_v35 = vld [vmem:[%s4142_s10 + $0x68] sm:$0xff] }
 0x7e4   :  { %v2507_v56 = vpack.i.bf16 %v1283_v47, %v1475_v48  ;;  %1619 = vmatpush.msra.mxu2 %v1167_v35  ;;  %v1142_v47 = vld [vmem:[%s4143_s9 + $0x40] sm:$0xff]  ;;  %v1161_v48 = vld [vmem:[%s4142_s10 + $0x38] sm:$0xff] }
 0x7e5   :  { %2503 = vrot.lane.b32.xlu2 %v2502_v0, %s2602_s26  ;;  %1694 = vmatpush.msrb.mxu0 %v1142_v47  ;;  %v1160_v0 = vld [vmem:[%s4142_s10 + $0x30] sm:$0xff]  ;;  %v1170_v47 = vld [vmem:[%s4142_s10 + $0x80] sm:$0xff] }
 0x7e6   :  { %2508 = vrot.lane.b32.xlu1 %v2507_v56, %s2603_s27  ;;  %v1140_v56 = vld [vmem:[%s4143_s9 + $0x30] sm:$0xff] }
 0x7e7   :  { %v1462_v53 = vpop.f32.mrf.mxu3 }
 0x7e8   :  { %v1472_v18 = vmul.f32 2.0, %v1462_v53  ;;  %v1139_v53 = vld [vmem:[%s4143_s9 + $0x28] sm:$0xff] }
 0x7e9   :  { %2381 = vmatmul.msk.f32.gmra.mxu1 %vm123_vm0, %v3482_v19 }
 0x7ea   :  { %v1476_v10 = vsub.f32 %v1472_v18, %v3394_v31  ;;  %v1502_v20 = vpop.f32.mrf.mxu0  ;;  %v1158_v18 = vld [vmem:[%s4142_s10 + $0x20] sm:$0xff] }
 0x7ec   :  { %v2512_v4 = vpack.i.bf16 %v1284_v8, %v1476_v10  ;;  %v1138_v8 = vld [vmem:[%s4143_s9 + $0x20] sm:$0xff]  ;;  %v1153_v10 = vld [vmem:[%s4143_s9 + $0x98] sm:$0xff] }
 0x7ed   :  { %1585 = vrot.lane.b32.xlu2 %v1502_v20, %s2602_s26 }
 0x7ee   :  { %2513 = vrot.lane.b32.xlu1 %v2512_v4, %s2603_s27  ;;  %v1137_v4 = vld [vmem:[%s4143_s9 + $0x18] sm:$0xff] }
 0x7ef   :  { %v1465_v6 = vpop.f32.mrf.mxu3 }
 0x7f0   :  { %v1473_v7 = vmul.f32 2.0, %v1465_v6  ;;  %v1156_v6 = vld [vmem:[%s4142_s10 + $0x10] sm:$0xff] }
 0x7f1   :  { %2382 = vmatmul.msk.f32.gmra.mxu1 %vm123_vm0, %v3496_v30 }
 0x7f2   :  { %v1477_v55 = vsub.f32 %v1473_v7, %v3388_v25  ;;  %v1505_v59 = vpop.f32.mrf.mxu0  ;;  %v1136_v7 = vld [vmem:[%s4143_s9 + $0x10] sm:$0xff] }
 0x7f3   :  { %v2517_v2 = vpack.i.bf16 %v1505_v59, %v1310_v39  ;;  %1520 = vmatpush.msra.mxu1 %v1505_v59  ;;  %v1166_v39 = vld [vmem:[%s4142_s10 + $0x60] sm:$0xff]  ;;  %v1135_v59 = vld [vmem:[%s4143_s9 + $0x8] sm:$0xff] }
 0x7f4   :  { %v2522_v9 = vpack.i.bf16 %v1285_v21, %v1477_v55  ;;  %1620 = vmatpush.msra.mxu2 %v1166_v39  ;;  %v1151_v21 = vld [vmem:[%s4143_s9 + $0x88] sm:$0xff] }
 0x7f5   :  { %2518 = vrot.lane.b32.xlu2 %v2517_v2, %s2602_s26  ;;  %1521 = vmatpush.msra.mxu1 %v1502_v20  ;;  %v1157_v20 = vld [vmem:[%s4142_s10 + $0x18] sm:$0xff]  ;;  %v1155_v55 = vld [vmem:[%s4142_s10 + $0x8] sm:$0xff]  ;;  %v1150_v2 = vld [vmem:[%s4143_s9 + $0x80] sm:$0xff] }
 0x7f6   :  { %2523 = vrot.lane.b32.xlu1 %v2522_v9, %s2603_s27  ;;  %v1154_v9 = vld [vmem:[%s4142_s10] sm:$0xff] }
 0x7f7   :  { %1522 = vmatpush.msra.mxu1 %v1499_v51  ;;  %v1468_v57 = vpop.f32.mrf.mxu3  ;;  %v1141_v51 = vld [vmem:[%s4143_s9 + $0x38] sm:$0xff] }
 0x7f8   :  { %v1474_v22 = vmul.f32 2.0, %v1468_v57  ;;  %1695 = vmatpush.msrb.mxu0 %v1141_v51  ;;  %v1134_v57 = vld [vmem:[%s4143_s9] sm:$0xff] }
 0x7f9   :  { %1523 = vmatpush.msra.mxu1 %v1496_v42  ;;  %v1164_v42 = vld [vmem:[%s4142_s10 + $0x50] sm:$0xff] }
 0x7fa   :  { %v1478_v50 = vsub.f32 %v1474_v22, %v3375_v52  ;;  %2395 = vmatmul.msk.f32.vlgmr.msra.gmra.mxu1 %vm123_vm0, %v3454_v13  ;;  %1696 = vmatpush.msrb.mxu0 %v1140_v56 }
 0x7fb   :  { %1728 = vmatpush.msrb.mxu1 %v1153_v10 }
 0x7fc   :  { %1697 = vmatpush.msrb.mxu0 %v1139_v53 }
 0x7fd   :  { %1395 = vrot.lane.b32.xlu2 %v1313_v40, %s2602_s26  ;;  %v1165_v40 = vld [vmem:[%s4142_s10 + $0x58] sm:$0xff]  ;;  %1729 = vmatpush.msrb.mxu1 %v1152_v5 }
 0x7fe   :  { %1571 = vrot.lane.b32.xlu1 %v1478_v50, %s2603_s27  ;;  %1621 = vmatpush.msra.mxu2 %v1165_v40  ;;  %v2484_v50 = vpop.permute.xlu0 %2483 }
 0x7ff   :  { %1698 = vmatpush.msrb.mxu0 %v1138_v8  ;;  %1730 = vmatpush.msrb.mxu1 %v1151_v21  ;;  %v2486_v15 = vunpack.i.h.bf16 %v2484_v50  ;;  %v2485_v29 = vunpack.i.l.bf16 %v2484_v50 }
 0x800   :  { %1622 = vmatpush.msra.mxu2 %v1164_v42 }
 0x801   :  { %1699 = vmatpush.msrb.mxu0 %v1137_v4  ;;  %1731 = vmatpush.msrb.mxu1 %v1150_v2  ;;  %v1401_v43 = vsel %vm123_vm0, %v3356_v58, %v2486_v15 }
 0x802   :  { %2396 = vmatmul.msk.f32.gmra.mxu1 %vm123_vm0, %v3468_v17  ;;  %1623 = vmatpush.msra.mxu2 %v1163_v44  ;;  %v1593_v44 = vsel %vm123_vm0, %v3400_v1, %v2485_v29 }
 0x803   :  { %1700 = vmatpush.msrb.mxu0 %v1136_v7 }
 0x804   :  { %1624 = vmatpush.msra.mxu2 %v1162_v46 }
 0x805   :  { %1701 = vmatpush.msrb.mxu0 %v1135_v59 }
 0x806   :  { %1379 = vrot.lane.b32.xlu1 %v1286_v62, %s2603_s27  ;;  %1625 = vmatpush.msra.mxu2 %v1161_v48  ;;  %v1173_v62 = vld [vmem:[%s4142_s10 + $0x98] sm:$0xff]  ;;  %v2489_v35 = vpop.permute.xlu0 %2488 }
 0x807   :  { %1702 = vmatpush.msrb.mxu0 %v1134_v57  ;;  %1658 = vmatpush.msrb.mxu3 %v1173_v62  ;;  %v2491_v56 = vunpack.i.h.bf16 %v2489_v35 }
 0x808   :  { %1626 = vmatpush.msra.mxu2 %v1160_v0 }
 0x809   :  { %1659 = vmatpush.msrb.mxu3 %v1172_v33 }
 0x80a   :  { %2397 = vmatmul.msk.f32.gmra.mxu1 %vm123_vm0, %v3482_v19  ;;  %1627 = vmatpush.msra.mxu2 %v1159_v60  ;;  %v2490_v60 = vunpack.i.l.bf16 %v2489_v35 }
 0x80b   :  { %1660 = vmatpush.msrb.mxu3 %v1171_v37 }
 0x80c   :  { %1628 = vmatpush.msra.mxu2 %v1158_v18  ;;  %v1594_v21 = vsel %vm123_vm0, %v3394_v31, %v2490_v60 }
 0x80d   :  { %1661 = vmatpush.msrb.mxu3 %v1170_v47 }
 0x80e   :  { %1629 = vmatpush.msra.mxu2 %v1157_v20  ;;  %v2494_v10 = vpop.permute.xlu0 %2493 }
 0x80f   :  { %v2496_v57 = vunpack.i.h.bf16 %v2494_v10 }
 0x810   :  { %1630 = vmatpush.msra.mxu2 %v1156_v6 }
 0x812   :  { %2398 = vmatmul.msk.f32.gmra.mxu1 %vm123_vm0, %v3496_v30  ;;  %1631 = vmatpush.msra.mxu2 %v1155_v55  ;;  %v1402_v55 = vsel %vm123_vm0, %v3341_v23, %v2491_v56 }
 0x814   :  { %1632 = vmatpush.msra.mxu2 %v1154_v9 }
 0x837   :  { %v2499_v22 = vpop.permute.xlu2 %2498 }
 0x838   :  { %v2501_v45 = vunpack.i.h.bf16 %v2499_v22  ;;  %v2500_v46 = vunpack.i.l.bf16 %v2499_v22  ;;  %v2495_v22 = vunpack.i.l.bf16 %v2494_v10 }
 0x83a   :  { %v1595_v35 = vsel %vm123_vm0, %v3388_v25, %v2495_v22 }
 0x83f   :  { %v2504_v54 = vpop.permute.xlu2 %2503 }
 0x840   :  { %v2506_v6 = vunpack.i.h.bf16 %v2504_v54  ;;  %v2505_v7 = vunpack.i.l.bf16 %v2504_v54 }
 0x847   :  { %v1586_v0 = vpop.permute.xlu2 %1585 }
 0x84f   :  { %v2519_v54 = vpop.permute.xlu2 %2518 }
 0x850   :  { %v2520_v33 = vunpack.i.l.bf16 %v2519_v54 }
 0x856   :  { %v1333_v32 = vpop.f32.mrf.mxu1 }
 0x857   :  { %v1345_v38 = vmul.f32 2.0, %v1333_v32 }
 0x858   :  { %v2509_v39 = vpop.permute.xlu1 %2508 }
 0x859   :  { %v3682_v40 = vsub.f32 %v1345_v38, %v3433_v28  ;;  %v2511_v41 = vunpack.i.h.bf16 %v2509_v39  ;;  %v2510_v42 = vunpack.i.l.bf16 %v2509_v39  ;;  %v1403_v38 = vsel %vm123_vm0, %v3363_v11, %v2496_v57  ;;  %v1556_v39 = vpop.permute.xlu0 %1555 }
 0x85a   :  { %v1596_v11 = vsel %vm123_vm0, %v3375_v52, %v1556_v39 }
 0x85b   :  { %v1405_v48 = vsel %vm548_vm7, %v1401_v43, %v2511_v41  ;;  %2403 = vmatmul.msk.f32.vlgmr.msrb.gmra.mxu1 %vm123_vm0, %v3682_v40  ;;  %v1597_v28 = vsel %vm548_vm7, %v1593_v44, %v2510_v42 }
 0x85c   :  { %v1601_v51 = vsel %vm553_vm8, %v1597_v28, %v2500_v46  ;;  %v3697_v58 = vsel %vm553_vm8, %v1405_v48, %v2501_v45  ;;  %v2521_v48 = vunpack.i.h.bf16 %v2519_v54 }
 0x85d   :  { %1633 = vmatmul.f32.vlgmr.msra.gmra.mxu2 %v1601_v51  ;;  %1703 = vmatmul.f32.vlgmr.msrb.gmra.mxu0 %v3697_v58 }
 0x85e   :  { %v1336_v53 = vpop.f32.mrf.mxu1 }
 0x85f   :  { %v1346_v18 = vmul.f32 2.0, %v1336_v53 }
 0x860   :  { %v2514_v8 = vpop.permute.xlu1 %2513 }
 0x861   :  { %v3701_v20 = vsub.f32 %v1346_v18, %v3435_v14  ;;  %v2516_v4 = vunpack.i.h.bf16 %v2514_v8  ;;  %v2515_v5 = vunpack.i.l.bf16 %v2514_v8  ;;  %v1364_v51 = vpop.permute.xlu0 %1363  ;;  %v1396_v18 = vpop.permute.xlu2 %1395 }
 0x862   :  { %v1404_v56 = vsel %vm123_vm0, %v3348_v49, %v1364_v51 }
 0x863   :  { %2404 = vmatmul.msk.f32.gmra.mxu1 %vm123_vm0, %v3701_v20  ;;  %v1598_v59 = vsel %vm548_vm7, %v1594_v21, %v2515_v5  ;;  %v1406_v2 = vsel %vm548_vm7, %v1402_v55, %v2516_v4 }
 0x864   :  { %v1602_v14 = vsel %vm553_vm8, %v1598_v59, %v2505_v7  ;;  %v3713_v9 = vsel %vm553_vm8, %v1406_v2, %v2506_v6 }
 0x865   :  { %1636 = vmatmul.f32.gmra.mxu2 %v1602_v14  ;;  %1706 = vmatmul.f32.gmra.mxu0 %v3713_v9 }
 0x866   :  { %v1339_v50 = vpop.f32.mrf.mxu1 }
 0x867   :  { %v1347_v23 = vmul.f32 2.0, %v1339_v50 }
 0x868   :  { %v2524_v62 = vpop.permute.xlu1 %2523 }
 0x869   :  { %v3717_v15 = vsub.f32 %v1347_v23, %v3437_v34  ;;  %v2526_v29 = vunpack.i.h.bf16 %v2524_v62  ;;  %v2525_v32 = vunpack.i.l.bf16 %v2524_v62 }
 0x86b   :  { %2405 = vmatmul.msk.f32.gmra.mxu1 %vm123_vm0, %v3717_v15  ;;  %v1599_v37 = vsel %vm548_vm7, %v1595_v35, %v2525_v32  ;;  %v1407_v41 = vsel %vm548_vm7, %v1403_v38, %v2526_v29 }
 0x86c   :  { %v1603_v34 = vsel %vm553_vm8, %v1599_v37, %v1586_v0  ;;  %v3729_v42 = vsel %vm553_vm8, %v1407_v41, %v2520_v33 }
 0x86d   :  { %1639 = vmatmul.f32.gmra.mxu2 %v1603_v34  ;;  %1709 = vmatmul.f32.gmra.mxu0 %v3729_v42 }
 0x86e   :  { %v1342_v43 = vpop.f32.mrf.mxu1 }
 0x86f   :  { %v1348_v44 = vmul.f32 2.0, %v1342_v43 }
 0x870   :  { %v1572_v45 = vpop.permute.xlu1 %1571 }
 0x871   :  { %v3735_v46 = vsub.f32 %v1348_v44, %v3439_v61  ;;  %v1600_v47 = vsel %vm548_vm7, %v1596_v11, %v1572_v45 }
 0x872   :  { %v1604_v28 = vsel %vm553_vm8, %v1600_v47, %v2521_v48 }
 0x873   :  { %2406 = vmatmul.msk.f32.gmra.mxu1 %vm123_vm0, %v3735_v46 }
 0x875   :  { %1642 = vmatmul.f32.gmra.mxu2 %v1604_v28 }
 0x877   :  { %v1525_v0 = vpop.f32.mrf.mxu1 }
 0x878   :  { %v1537_v60 = vmul.f32 2.0, %v1525_v0  ;;  %v1380_v53 = vpop.permute.xlu1 %1379 }
 0x879   :  { %v1408_v61 = vsel %vm548_vm7, %v1404_v56, %v1380_v53 }
 0x87a   :  { %v1541_v8 = vsub.f32 %v1537_v60, %v3458_v16  ;;  %v3746_v10 = vsel %vm553_vm8, %v1408_v61, %v1396_v18 }
 0x87b   :  { %1712 = vmatmul.f32.gmra.mxu0 %v3746_v10 }
 0x87c   :  { %2399 = vmatmul.msk.f32.vlgmr.msrb.gmra.mxu3 %vm123_vm0, %v1541_v8 }
 0x87f   :  { %v1528_v4 = vpop.f32.mrf.mxu1 }
 0x880   :  { %v1538_v5 = vmul.f32 2.0, %v1528_v4 }
 0x882   :  { %v1542_v6 = vsub.f32 %v1538_v5, %v3472_v12 }
 0x884   :  { %2400 = vmatmul.msk.f32.gmra.mxu3 %vm123_vm0, %v1542_v6 }
 0x887   :  { %v1531_v49 = vpop.f32.mrf.mxu1 }
 0x888   :  { %v1539_v7 = vmul.f32 2.0, %v1531_v49 }
 0x88a   :  { %v1543_v21 = vsub.f32 %v1539_v7, %v3486_v63  ;;  %v2534_v63 = vld [vmem:[%s4144_s11] ss:$0 sm:$0xff] }
 0x88c   :  { %2401 = vmatmul.msk.f32.gmra.mxu3 %vm123_vm0, %v1543_v21 }
 0x88f   :  { %v1534_v16 = vpop.f32.mrf.mxu1 }
 0x890   :  { %v1540_v55 = vmul.f32 2.0, %v1534_v16 }
 0x892   :  { %v1544_v59 = vsub.f32 %v1540_v55, %v3500_v36 }
 0x894   :  { %2402 = vmatmul.msk.f32.gmra.mxu3 %vm123_vm0, %v1544_v59 }
 0x8d8   :  { %v1733_v14 = vpop.f32.mrf.mxu1 }
 0x8da   :  { %v1704_v57 = vpop.f32.mrf.mxu0 }
 0x8e0   :  { %v1634_v2 = vpop.f32.mrf.mxu2  ;;  %v1736_v23 = vpop.f32.mrf.mxu1 }
 0x8e2   :  { %v1707_v62 = vpop.f32.mrf.mxu0 }
 0x8e8   :  { %v1637_v12 = vpop.f32.mrf.mxu2  ;;  %v1739_v11 = vpop.f32.mrf.mxu1 }
 0x8ea   :  { %v1710_v45 = vpop.f32.mrf.mxu0 }
 0x8f0   :  { %v1640_v39 = vpop.f32.mrf.mxu2  ;;  %v1742_v4 = vpop.f32.mrf.mxu1 }
 0x8f8   :  { %v1643_v51 = vpop.f32.mrf.mxu2  ;;  %v1713_v18 = vpop.f32.mrf.mxu0 }
 0x8ff   :  { %v1663_v22 = vpop.f32.mrf.mxu3 }
 0x900   :  { %v1664_v50 = vadd.f32 %v1663_v22, %v1634_v2 }
 0x902   :  { %v1705_v54 = vadd.f32 %v1704_v57, %v1664_v50 }
 0x904   :  { %v1734_v29 = vadd.f32 %v1733_v14, %v1705_v54 }
 0x906   :  { %v1748_v36 = vadd.f32 %v2534_v63, %v1734_v29 }
 0x907   :  { %v1666_v32 = vpop.f32.mrf.mxu3 }
 0x908   :  { %v1667_v33 = vadd.f32 %v1666_v32, %v1637_v12  ;;  %v2407_v41 = vmul.f32 -1.442695, %v1748_v36 }
 0x90a   :  { %v1708_v35 = vadd.f32 %v1707_v62, %v1667_v33  ;;  %2561 = vpow2.f32 %v2407_v41 }
 0x90c   :  { %v1737_v38 = vadd.f32 %v1736_v23, %v1708_v35 }
 0x90e   :  { %v1749_v37 = vadd.f32 %v2534_v63, %v1737_v38 }
 0x90f   :  { %v1669_v34 = vpop.f32.mrf.mxu3 }
 0x910   :  { %v2408_v43 = vmul.f32 -1.442695, %v1749_v37  ;;  %v1670_v44 = vadd.f32 %v1669_v34, %v1640_v39  ;;  %v2562_v53 = vpop.eup %2561 }
 0x911   :  { %v3759_v5 = vadd.f32 1.0, %v2562_v53 }
 0x912   :  { %v1711_v47 = vadd.f32 %v1710_v45, %v1670_v44  ;;  %2563 = vpow2.f32 %v2408_v43 }
 0x913   :  { %vm1773_vm1 = vweird.f32 %v3759_v5 }
 0x914   :  { %v1740_v48 = vadd.f32 %v1739_v11, %v1711_v47 }
 0x916   :  { %v1750_v28 = vadd.f32 %v2534_v63, %v1740_v48 }
 0x917   :  { %v1672_v0 = vpop.f32.mrf.mxu3 }
 0x918   :  { %v2409_v56 = vmul.f32 -1.442695, %v1750_v28  ;;  %v1673_v60 = vadd.f32 %v1672_v0, %v1643_v51  ;;  %v2564_v61 = vpop.eup %2563 }
 0x919   :  { %v3761_v49 = vadd.f32 1.0, %v2564_v61  ;;  %v1779_v61 = vand.u32 2147483648, %v3759_v5 }
 0x91a   :  { %2565 = vpow2.f32 %v2409_v56  ;;  %v1714_v8 = vadd.f32 %v1713_v18, %v1673_v60  ;;  %v1777_v18 = vand.u32 2147483647, %v3759_v5 }
 0x91b   :  { %2567 = vrcp.f32 %v3759_v5  ;;  %vm1788_vm4 = vweird.f32 %v3761_v49  ;;  %v1792_v47 = vand.u32 2147483647, %v3761_v49  ;;  %v1794_v48 = vand.u32 2147483648, %v3761_v49 }
 0x91c   :  { %v1743_v6 = vadd.f32 %v1742_v4, %v1714_v8  ;;  %2569 = vrcp.f32 %v3761_v49 }
 0x91e   :  { %v1751_v7 = vadd.f32 %v2534_v63, %v1743_v6 }
 0x920   :  { %v2566_v21 = vpop.eup %2565  ;;  %v2410_v16 = vmul.f32 -1.442695, %v1751_v7  ;;  %v1795_v7 = vor.u32 1.1754944e-38, %v1794_v48 }
 0x921   :  { %v1766_v55 = vadd.f32 1.0, %v2566_v21  ;;  %v3765_v59 = vpop.eup %2567 }
 0x922   :  { %2571 = vpow2.f32 %v2410_v16  ;;  %v2570_v2 = vpop.eup %2569  ;;  %v1769_v54 = vmul.f32 %v3765_v59, %v3759_v5  ;;  %vm1774_vm6 = vweird.f32 %v3765_v59 }
 0x923   :  { %2573 = vrcp.f32 %v1766_v55  ;;  %v1784_v12 = vmul.f32 %v2570_v2, %v3761_v49  ;;  %vm1789_vm9 = vweird.f32 %v2570_v2  ;;  %vm1803_vm14 = vweird.f32 %v1766_v55 }
 0x924   :  { %v1770_v29 = vsub.f32 1.0, %v1769_v54  ;;  %v1807_v41 = vand.u32 2147483647, %v1766_v55  ;;  %v1809_v34 = vand.u32 2147483648, %v1766_v55  ;;  %vm3783_vm12 = vmor %vm1788_vm4, %vm1789_vm9  ;;  %vm1793_vm9 = vcmp.eq.f32.partialorder %v1792_v47, 8.507059e+37  ;;  %v1189_v54 = vld [vmem:[%s4145_s12 + $0x70] sm:$0xff] }
 0x925   :  { %v1785_v62 = vsub.f32 1.0, %v1784_v12  ;;  %v1190_v12 = vld [vmem:[%s4145_s12 + $0x78] sm:$0xff] }
 0x926   :  { %v1771_v36 = vmul.f32 %v3765_v59, %v1770_v29  ;;  %v1810_v53 = vor.u32 1.1754944e-38, %v1809_v34  ;;  %vm1808_vm2 = vcmp.eq.f32.partialorder %v1807_v41, 8.507059e+37  ;;  %v1185_v29 = vld [vmem:[%s4145_s12 + $0x50] sm:$0xff] }
 0x927   :  { %v1786_v35 = vmul.f32 %v2570_v2, %v1785_v62  ;;  %v1187_v62 = vld [vmem:[%s4145_s12 + $0x60] sm:$0xff] }
 0x928   :  { %v2572_v14 = vpop.eup %2571  ;;  %v1772_v56 = vadd.f32 %v3765_v59, %v1771_v36  ;;  %v1179_v36 = vld [vmem:[%s4145_s12 + $0x20] sm:$0xff] }
 0x929   :  { %v2574_v57 = vpop.eup %2573  ;;  %v1767_v22 = vadd.f32 1.0, %v2572_v14  ;;  %v1787_v11 = vadd.f32 %v2570_v2, %v1786_v35  ;;  %v1180_v35 = vld [vmem:[%s4145_s12 + $0x28] sm:$0xff] }
 0x92a   :  { %v1799_v50 = vmul.f32 %v2574_v57, %v1766_v55  ;;  %vm1804_vm5 = vweird.f32 %v2574_v57 }
 0x92b   :  { %2575 = vrcp.f32 %v1767_v22  ;;  %v1824_v37 = vand.u32 2147483648, %v1767_v22  ;;  %v1822_v44 = vand.u32 2147483647, %v1767_v22  ;;  %vm3772_vm3 = vmor %vm1803_vm14, %vm1804_vm5  ;;  %vm1818_vm10 = vweird.f32 %v1767_v22 }
 0x92c   :  { %v1800_v23 = vsub.f32 1.0, %v1799_v50  ;;  %v1791_v4 = vsel %vm3783_vm12, %v2570_v2, %v1787_v11  ;;  %vm1775_vm5 = vmor %vm1773_vm1, %vm1774_vm6  ;;  %v1780_v2 = vor.u32 1.1754944e-38, %v1779_v61  ;;  %vm1778_vm14 = vcmp.eq.f32.partialorder %v1777_v18, 8.507059e+37  ;;  %v1210_v18 = vld [vmem:[%s4146_s13 + $0x78] sm:$0xff] }
 0x92d   :  { %v1825_v60 = vor.u32 1.1754944e-38, %v1824_v37  ;;  %vm1823_vm13 = vcmp.eq.f32.partialorder %v1822_v44, 8.507059e+37  ;;  %v1776_v16 = vsel %vm1775_vm5, %v3765_v59, %v1772_v56  ;;  %v3805_v55 = vsel %vm1793_vm9, %v1795_v7, %v1791_v4  ;;  %v1175_v37 = vld [vmem:[%s4145_s12] sm:$0xff]  ;;  %v1206_v61 = vld [vmem:[%s4146_s13 + $0x58] sm:$0xff] }
 0x92e   :  { %v1801_v63 = vmul.f32 %v2574_v57, %v1800_v23  ;;  %v1188_v23 = vld [vmem:[%s4145_s12 + $0x68] sm:$0xff]  ;;  %v1203_v4 = vld [vmem:[%s4146_s13 + $0x40] sm:$0xff]  ;;  %v1202_v7 = vld [vmem:[%s4146_s13 + $0x38] sm:$0xff] }
 0x930   :  { %v1802_v39 = vadd.f32 %v2574_v57, %v1801_v63  ;;  %v1184_v63 = vld [vmem:[%s4145_s12 + $0x48] sm:$0xff] }
 0x931   :  { %v2576_v32 = vpop.eup %2575 }
 0x932   :  { %v1814_v33 = vmul.f32 %v2576_v32, %v1767_v22  ;;  %vm1819_vm15 = vweird.f32 %v2576_v32  ;;  %v1806_v51 = vsel %vm3772_vm3, %v2574_v57, %v1802_v39  ;;  %v3812_v57 = vsel %vm1778_vm14, %v1780_v2, %v1776_v16  ;;  %v1176_v39 = vld [vmem:[%s4145_s12 + $0x8] sm:$0xff]  ;;  %v1199_v2 = vld [vmem:[%s4146_s13 + $0x20] sm:$0xff] }
 0x933   :  { %vm1820_vm11 = vmor %vm1818_vm10, %vm1819_vm15  ;;  %v3794_v49 = vsel %vm1808_vm2, %v1810_v53, %v1806_v51  ;;  %v3822_v5 = vmul.f32 %v3400_v1, %v3812_v57  ;;  %v1194_v51 = vld [vmem:[%s4145_s12 + $0x98] sm:$0xff]  ;;  %v2594_v53 = vld [vmem:[%s4160_s1 + $0x28] sm:$0xff] }
 0x934   :  { %v1815_v38 = vsub.f32 1.0, %v1814_v33  ;;  %v3810_v14 = vmul.f32 %v3388_v25, %v3794_v49  ;;  %v1181_v33 = vld [vmem:[%s4145_s12 + $0x30] sm:$0xff]  ;;  %v1200_v16 = vld [vmem:[%s4146_s13 + $0x28] sm:$0xff] }
 0x936   :  { %v1816_v43 = vmul.f32 %v2576_v32, %v1815_v38  ;;  %v1177_v38 = vld [vmem:[%s4145_s12 + $0x10] sm:$0xff] }
 0x938   :  { %v1817_v28 = vadd.f32 %v2576_v32, %v1816_v43 }
 0x93a   :  { %v1821_v8 = vsel %vm1820_vm11, %v2576_v32, %v1817_v28  ;;  %v1183_v32 = vld [vmem:[%s4145_s12 + $0x40] sm:$0xff] }
 0x93b   :  { %v3792_v6 = vsel %vm1823_vm13, %v1825_v60, %v1821_v8  ;;  %v1192_v60 = vld [vmem:[%s4145_s12 + $0x88] sm:$0xff] }
 0x93c   :  { %v3802_v21 = vmul.f32 %v3375_v52, %v3792_v6  ;;  %v3817_v52 = vmul.f32 %v3394_v31, %v3805_v55  ;;  %v1204_v8 = vld [vmem:[%s4146_s13 + $0x48] sm:$0xff] }
 0x93e   :  { %1844 = vmatpush.msrb.mxu2 %v3802_v21 }
 0x940   :  { %1845 = vmatpush.msrb.mxu2 %v3810_v14 }
 0x942   :  { %1846 = vmatpush.msrb.mxu2 %v3817_v52 }
 0x944   :  { %1847 = vmatpush.msrb.mxu2 %v3822_v5 }
 0x945   :  { %2411 = vmatmul.msk.f32.vlgmr.msrb.gmra.mxu2 %vm123_vm0, %v3381_v24 }
 0x946   :  { %2036 = vmatpush.msra.mxu2 %v1210_v18 }
 0x94d   :  { %2412 = vmatmul.msk.f32.gmra.mxu2 %vm123_vm0, %v3407_v26 }
 0x955   :  { %2413 = vmatmul.msk.f32.gmra.mxu2 %vm123_vm0, %v3414_v3 }
 0x95d   :  { %2414 = vmatmul.msk.f32.gmra.mxu2 %vm123_vm0, %v3421_v27 }
 0x9c8   :  { %v3833_v25 = vpop.f32.mrf.mxu2 }
 0x9d0   :  { %v3835_v31 = vpop.f32.mrf.mxu2 }
 0x9d1   :  { %v2527_v59 = vpack.i.bf16 %v3835_v31, %v3833_v25 }
 0x9d3   :  { %2528 = vrot.lane.b32.xlu0 %v2527_v59, %s2600_s24  ;;  %v1198_v59 = vld [vmem:[%s4146_s13 + $0x18] sm:$0xff] }
 0x9d8   :  { %v3840_v22 = vpop.f32.mrf.mxu2 }
 0x9e0   :  { %v3842_v50 = vpop.f32.mrf.mxu2 }
 0x9e1   :  { %1873 = vmatpush.msra.mxu3 %v3842_v50  ;;  %1910 = vmatpush.msra.mxu0 %v3842_v50 }
 0x9e3   :  { %1874 = vmatpush.msra.mxu3 %v3840_v22  ;;  %1911 = vmatpush.msra.mxu0 %v3840_v22 }
 0x9e5   :  { %1875 = vmatpush.msra.mxu3 %v3835_v31  ;;  %1912 = vmatpush.msra.mxu0 %v3835_v31 }
 0x9e7   :  { %1876 = vmatpush.msra.mxu3 %v3833_v25  ;;  %1913 = vmatpush.msra.mxu0 %v3833_v25 }
 0x9e8   :  { %2415 = vmatmul.msk.f32.vlgmr.msra.gmra.mxu3 %vm123_vm0, %v3381_v24  ;;  %2419 = vmatmul.msk.f32.vlgmr.msra.gmra.mxu0 %vm123_vm0, %v3454_v13  ;;  %v1186_v24 = vld [vmem:[%s4145_s12 + $0x58] sm:$0xff] }
 0x9e9   :  { %2094 = vmatpush.msrb.mxu0 %v1190_v12  ;;  %v1196_v12 = vld [vmem:[%s4146_s13 + $0x8] sm:$0xff] }
 0x9eb   :  { %2095 = vmatpush.msrb.mxu0 %v1189_v54  ;;  %v1195_v54 = vld [vmem:[%s4146_s13] sm:$0xff] }
 0x9ed   :  { %2096 = vmatpush.msrb.mxu0 %v1188_v23 }
 0x9ef   :  { %2097 = vmatpush.msrb.mxu0 %v1187_v62 }
 0x9f0   :  { %2416 = vmatmul.msk.f32.gmra.mxu3 %vm123_vm0, %v3407_v26  ;;  %2420 = vmatmul.msk.f32.gmra.mxu0 %vm123_vm0, %v3468_v17  ;;  %v1182_v26 = vld [vmem:[%s4145_s12 + $0x38] sm:$0xff] }
 0x9f1   :  { %2098 = vmatpush.msrb.mxu0 %v1186_v24 }
 0x9f3   :  { %2099 = vmatpush.msrb.mxu0 %v1185_v29 }
 0x9f5   :  { %2100 = vmatpush.msrb.mxu0 %v1184_v63  ;;  %v1213_v63 = vld [vmem:[%s4146_s13 + $0x90] sm:$0xff] }
 0x9f7   :  { %2101 = vmatpush.msrb.mxu0 %v1183_v32 }
 0x9f8   :  { %2417 = vmatmul.msk.f32.gmra.mxu3 %vm123_vm0, %v3414_v3  ;;  %2421 = vmatmul.msk.f32.gmra.mxu0 %vm123_vm0, %v3482_v19  ;;  %v1178_v3 = vld [vmem:[%s4145_s12 + $0x18] sm:$0xff] }
 0x9f9   :  { %2102 = vmatpush.msrb.mxu0 %v1182_v26 }
 0x9fb   :  { %2103 = vmatpush.msrb.mxu0 %v1181_v33 }
 0x9fd   :  { %2104 = vmatpush.msrb.mxu0 %v1180_v35  ;;  %v1212_v35 = vld [vmem:[%s4146_s13 + $0x88] sm:$0xff] }
 0x9ff   :  { %2105 = vmatpush.msrb.mxu0 %v1179_v36 }
 0xa00   :  { %2418 = vmatmul.msk.f32.gmra.mxu3 %vm123_vm0, %v3421_v27  ;;  %2422 = vmatmul.msk.f32.gmra.mxu0 %vm123_vm0, %v3496_v30 }
 0xa01   :  { %2106 = vmatpush.msrb.mxu0 %v1178_v3 }
 0xa03   :  { %2107 = vmatpush.msrb.mxu0 %v1177_v38 }
 0xa05   :  { %2108 = vmatpush.msrb.mxu0 %v1176_v39 }
 0xa07   :  { %2109 = vmatpush.msrb.mxu0 %v1175_v37 }
 0xa08   :  { %2110 = vmatmul.f32.vlgmr.msrb.gmra.mxu0 %v3697_v58 }
 0xa10   :  { %2113 = vmatmul.f32.gmra.mxu0 %v3713_v9 }
 0xa18   :  { %2116 = vmatmul.f32.gmra.mxu0 %v3729_v42 }
 0xa20   :  { %2119 = vmatmul.f32.gmra.mxu0 %v3746_v10 }
 0xa45   :  { %v2529_v23 = vpop.permute.xlu0 %2528 }
 0xa46   :  { %v2530_v62 = vunpack.i.l.bf16 %v2529_v23  ;;  %v2531_v36 = vunpack.i.h.bf16 %v2529_v23 }
 0xa48   :  { %v2012_v24 = vsel %vm123_vm0, %v3822_v5, %v2530_v62  ;;  %v2013_v38 = vsel %vm123_vm0, %v3817_v52, %v2531_v36 }
 0xa65   :  { %v1915_v27 = vpop.f32.mrf.mxu0 }
 0xa66   :  { %2000 = vrot.lane.b32.xlu2 %v1915_v27, %s2602_s26 }
 0xa6b   :  { %v1878_v41 = vpop.f32.mrf.mxu3 }
 0xa6c   :  { %v1890_v34 = vmul.f32 2.0, %v1878_v41 }
 0xa6d   :  { %v1918_v43 = vpop.f32.mrf.mxu0 }
 0xa6e   :  { %v1894_v44 = vsub.f32 %v1890_v34, %v3822_v5  ;;  %1972 = vrot.lane.b32.xlu2 %v3840_v22, %s2600_s24  ;;  %v1211_v5 = vld [vmem:[%s4146_s13 + $0x80] sm:$0xff] }
 0xa70   :  { %1984 = vrot.lane.b32.xlu1 %v1894_v44, %s2603_s27 }
 0xa73   :  { %v1881_v58 = vpop.f32.mrf.mxu3 }
 0xa74   :  { %v1891_v11 = vmul.f32 2.0, %v1881_v58 }
 0xa75   :  { %v1921_v9 = vpop.f32.mrf.mxu0 }
 0xa76   :  { %v1895_v42 = vsub.f32 %v1891_v11, %v3817_v52  ;;  %1974 = vrot.lane.b32.xlu2 %v3842_v50, %s2600_s24 }
 0xa78   :  { %2002 = vrot.lane.b32.xlu1 %v1918_v43, %s2602_s26  ;;  %1986 = vrot.lane.b32.xlu0 %v1895_v42, %s2603_s27 }
 0xa7b   :  { %v1884_v10 = vpop.f32.mrf.mxu3 }
 0xa7c   :  { %v1892_v45 = vmul.f32 2.0, %v1884_v10 }
 0xa7d   :  { %v1924_v47 = vpop.f32.mrf.mxu0 }
 0xa7e   :  { %v1896_v48 = vsub.f32 %v1892_v45, %v3810_v14  ;;  %2167 = vrot.lane.b32.xlu2 %v3400_v1, %s2600_s24  ;;  %1939 = vmatpush.msra.mxu1 %v1924_v47  ;;  %v1193_v1 = vld [vmem:[%s4145_s12 + $0x90] sm:$0xff] }
 0xa80   :  { %1940 = vmatpush.msra.mxu1 %v1921_v9  ;;  %2004 = vrot.lane.b32.xlu1 %v1921_v9, %s2602_s26 }
 0xa81   :  { %1988 = vrot.lane.b32.xlu0 %v1896_v48, %s2603_s27 }
 0xa82   :  { %1941 = vmatpush.msra.mxu1 %v1918_v43 }
 0xa83   :  { %v1887_v28 = vpop.f32.mrf.mxu3 }
 0xa84   :  { %v1893_v0 = vmul.f32 2.0, %v1887_v28  ;;  %1942 = vmatpush.msra.mxu1 %v1915_v27 }
 0xa85   :  { %2423 = vmatmul.msk.f32.vlgmr.msra.gmra.mxu1 %vm123_vm0, %v3454_v13  ;;  %v1191_v13 = vld [vmem:[%s4145_s12 + $0x80] sm:$0xff] }
 0xa86   :  { %v1897_v56 = vsub.f32 %v1893_v0, %v3802_v21  ;;  %2135 = vmatpush.msrb.mxu1 %v1194_v51 }
 0xa88   :  { %2006 = vrot.lane.b32.xlu1 %v1924_v47, %s2602_s26  ;;  %2136 = vmatpush.msrb.mxu1 %v1193_v1 }
 0xa89   :  { %1990 = vrot.lane.b32.xlu0 %v1897_v56, %s2603_s27 }
 0xa8a   :  { %2137 = vmatpush.msrb.mxu1 %v1192_v60 }
 0xa8c   :  { %2138 = vmatpush.msrb.mxu1 %v1191_v13 }
 0xa8d   :  { %2424 = vmatmul.msk.f32.gmra.mxu1 %vm123_vm0, %v3468_v17  ;;  %v1209_v17 = vld [vmem:[%s4146_s13 + $0x70] sm:$0xff] }
 0xa8e   :  { %2037 = vmatpush.msra.mxu2 %v1209_v17  ;;  %v2111_v17 = vpop.f32.mrf.mxu0 }
 0xa90   :  { %2169 = vrot.lane.b32.xlu1 %v2594_v53, %s2600_s24 }
 0xa95   :  { %2425 = vmatmul.msk.f32.gmra.mxu1 %vm123_vm0, %v3482_v19  ;;  %v1208_v19 = vld [vmem:[%s4146_s13 + $0x68] sm:$0xff] }
 0xa96   :  { %2038 = vmatpush.msra.mxu2 %v1208_v19 }
 0xa9d   :  { %2426 = vmatmul.msk.f32.gmra.mxu1 %vm123_vm0, %v3496_v30  ;;  %v1207_v30 = vld [vmem:[%s4146_s13 + $0x60] sm:$0xff] }
 0xa9e   :  { %2039 = vmatpush.msra.mxu2 %v1207_v30 }
 0xaa0   :  { %2040 = vmatpush.msra.mxu2 %v1206_v61 }
 0xaa5   :  { %2431 = vmatmul.msk.f32.vlgmr.msrb.gmra.mxu1 %vm123_vm0, %v3682_v40  ;;  %v1205_v40 = vld [vmem:[%s4146_s13 + $0x50] sm:$0xff] }
 0xaa6   :  { %2041 = vmatpush.msra.mxu2 %v1205_v40  ;;  %v2535_v40 = vld [vmem:[%s4147_s14] ss:$0 sm:$0xff] }
 0xaa8   :  { %2042 = vmatpush.msra.mxu2 %v1204_v8 }
 0xaaa   :  { %2043 = vmatpush.msra.mxu2 %v1203_v4  ;;  %v2114_v4 = vpop.f32.mrf.mxu0 }
 0xaac   :  { %2044 = vmatpush.msra.mxu2 %v1202_v7 }
 0xaad   :  { %2432 = vmatmul.msk.f32.gmra.mxu1 %vm123_vm0, %v3701_v20  ;;  %v1201_v20 = vld [vmem:[%s4146_s13 + $0x30] sm:$0xff] }
 0xaae   :  { %2045 = vmatpush.msra.mxu2 %v1201_v20 }
 0xab0   :  { %2046 = vmatpush.msra.mxu2 %v1200_v16 }
 0xab2   :  { %2047 = vmatpush.msra.mxu2 %v1199_v2  ;;  %v2117_v23 = vpop.f32.mrf.mxu0 }
 0xab4   :  { %2048 = vmatpush.msra.mxu2 %v1198_v59 }
 0xab5   :  { %2433 = vmatmul.msk.f32.gmra.mxu1 %vm123_vm0, %v3717_v15  ;;  %v1197_v15 = vld [vmem:[%s4146_s13 + $0x10] sm:$0xff] }
 0xab6   :  { %2049 = vmatpush.msra.mxu2 %v1197_v15 }
 0xab8   :  { %2050 = vmatpush.msra.mxu2 %v1196_v12 }
 0xaba   :  { %2051 = vmatpush.msra.mxu2 %v1195_v54 }
 0xabd   :  { %2434 = vmatmul.msk.f32.gmra.mxu1 %vm123_vm0, %v3735_v46  ;;  %v1214_v46 = vld [vmem:[%s4146_s13 + $0x98] sm:$0xff] }
 0xabe   :  { %2077 = vmatpush.msrb.mxu3 %v1214_v46 }
 0xac0   :  { %v2001_v32 = vpop.permute.xlu2 %2000  ;;  %2078 = vmatpush.msrb.mxu3 %v1213_v63 }
 0xac2   :  { %2079 = vmatpush.msrb.mxu3 %v1212_v35 }
 0xac4   :  { %2080 = vmatpush.msrb.mxu3 %v1211_v5  ;;  %v2595_v5 = vld [vmem:[%s4160_s1 + $0x30] sm:$0xff] }
 0xac8   :  { %v1973_v41 = vpop.permute.xlu2 %1972 }
 0xac9   :  { %v2014_v43 = vsel %vm123_vm0, %v3810_v14, %v1973_v41 }
 0xad0   :  { %v1975_v9 = vpop.permute.xlu2 %1974 }
 0xad1   :  { %v2015_v52 = vsel %vm123_vm0, %v3802_v21, %v1975_v9 }
 0xae2   :  { %v1985_v29 = vpop.permute.xlu1 %1984 }
 0xae3   :  { %v2016_v26 = vsel %vm548_vm7, %v2012_v24, %v1985_v29 }
 0xae4   :  { %v2020_v33 = vsel %vm553_vm8, %v2016_v26, %v2001_v32 }
 0xae5   :  { %2052 = vmatmul.f32.vlgmr.msra.gmra.mxu2 %v2020_v33 }
 0xaea   :  { %v2003_v3 = vpop.permute.xlu1 %2002  ;;  %v1987_v39 = vpop.permute.xlu0 %1986 }
 0xaeb   :  { %v2017_v37 = vsel %vm548_vm7, %v2013_v38, %v1987_v39 }
 0xaec   :  { %v2021_v27 = vsel %vm553_vm8, %v2017_v37, %v2003_v3  ;;  %v2120_v3 = vpop.f32.mrf.mxu0 }
 0xaed   :  { %2055 = vmatmul.f32.gmra.mxu2 %v2021_v27 }
 0xaf2   :  { %v2005_v34 = vpop.permute.xlu1 %2004 }
 0xaf3   :  { %v1989_v44 = vpop.permute.xlu0 %1988 }
 0xaf4   :  { %v2018_v58 = vsel %vm548_vm7, %v2014_v43, %v1989_v44  ;;  %v2168_v44 = vpop.permute.xlu2 %2167 }
 0xaf5   :  { %v2022_v11 = vsel %vm553_vm8, %v2018_v58, %v2005_v34  ;;  %v2596_v34 = vld [vmem:[%s4160_s1 + $0x38] sm:$0xff] }
 0xaf6   :  { %2058 = vmatmul.f32.gmra.mxu2 %v2022_v11  ;;  %v2184_v11 = vsub.f32 1.0, %v3805_v55 }
 0xafa   :  { %v2007_v42 = vpop.permute.xlu1 %2006 }
 0xafb   :  { %v1991_v10 = vpop.permute.xlu0 %1990 }
 0xafc   :  { %v2019_v45 = vsel %vm548_vm7, %v2015_v52, %v1991_v10  ;;  %vm4169_vm7 = vcmask 31744  }
 0xafd   :  { %v2023_v47 = vsel %vm553_vm8, %v2019_v45, %v2007_v42  ;;  %v2183_v45 = vsub.f32 1.0, %v3812_v57  ;;  %vm4170_vm8 = vmmov %vm4169_vm7 }
 0xafe   :  { %2061 = vmatmul.f32.gmra.mxu2 %v2023_v47 }
 0xb02   :  { %v1944_v48 = vpop.f32.mrf.mxu1  ;;  %v2170_v58 = vpop.permute.xlu1 %2169 }
 0xb03   :  { %v1956_v28 = vmul.f32 2.0, %v1944_v48  ;;  %v2180_v42 = vmul.f32 %v2170_v58, %v3805_v55  ;;  %v2179_v48 = vmul.f32 %v2168_v44, %v3812_v57 }
 0xb05   :  { %v1960_v14 = vsub.f32 %v1956_v28, %v3833_v25 }
 0xb07   :  { %2427 = vmatmul.msk.f32.vlgmr.msrb.gmra.mxu3 %vm123_vm0, %v1960_v14 }
 0xb0a   :  { %v1947_v51 = vpop.f32.mrf.mxu1 }
 0xb0b   :  { %v1957_v0 = vmul.f32 2.0, %v1947_v51 }
 0xb0d   :  { %v1961_v1 = vsub.f32 %v1957_v0, %v3835_v31  ;;  %v2185_v0 = vsub.f32 1.0, %v3794_v49 }
 0xb0f   :  { %2428 = vmatmul.msk.f32.gmra.mxu3 %vm123_vm0, %v1961_v1 }
 0xb12   :  { %v1950_v56 = vpop.f32.mrf.mxu1 }
 0xb13   :  { %v1958_v21 = vmul.f32 2.0, %v1950_v56 }
 0xb15   :  { %v1962_v60 = vsub.f32 %v1958_v21, %v3840_v22 }
 0xb17   :  { %2429 = vmatmul.msk.f32.gmra.mxu3 %vm123_vm0, %v1962_v60 }
 0xb1a   :  { %v1953_v13 = vpop.f32.mrf.mxu1 }
 0xb1b   :  { %v1959_v53 = vmul.f32 2.0, %v1953_v13  ;;  %v2186_v13 = vsub.f32 1.0, %v3792_v6 }
 0xb1d   :  { %v1963_v18 = vsub.f32 %v1959_v53, %v3842_v50 }
 0xb1f   :  { %2430 = vmatmul.msk.f32.gmra.mxu3 %vm123_vm0, %v1963_v18 }
 0xb22   :  { %v2140_v19 = vpop.f32.mrf.mxu1 }
 0xb2a   :  { %v2143_v20 = vpop.f32.mrf.mxu1 }
 0xb32   :  { %v2146_v24 = vpop.f32.mrf.mxu1 }
 0xb3a   :  { %v2149_v39 = vpop.f32.mrf.mxu1 }
 0xb68   :  { %v2053_v25 = vpop.f32.mrf.mxu2 }
 0xb70   :  { %v2056_v8 = vpop.f32.mrf.mxu2 }
 0xb79   :  { %v2059_v15 = vpop.f32.mrf.mxu2 }
 0xb81   :  { %v2062_v33 = vpop.f32.mrf.mxu2 }
 0xb8a   :  { %v2082_v30 = vpop.f32.mrf.mxu3 }
 0xb8b   :  { %v2083_v61 = vadd.f32 %v2082_v30, %v2053_v25 }
 0xb8d   :  { %v2112_v31 = vadd.f32 %v2111_v17, %v2083_v61  ;;  %v2235_v17 = vld [vmem:[%s4149_s15 + $0x18] sm:$0xff] }
 0xb8e   :  { %2260 = vmatpush.msrb.mxu2 %v2235_v17 }
 0xb8f   :  { %v2141_v22 = vadd.f32 %v2140_v19, %v2112_v31  ;;  %v2233_v19 = vld [vmem:[%s4149_s15 + $0x8] sm:$0xff] }
 0xb91   :  { %v2155_v7 = vadd.f32 %v2535_v40, %v2141_v22 }
 0xb92   :  { %v2085_v16 = vpop.f32.mrf.mxu3 }
 0xb93   :  { %2577 = vtanh.f32 %v2155_v7  ;;  %v2086_v50 = vadd.f32 %v2085_v16, %v2056_v8  ;;  %v2536_v8 = vld [vmem:[%s4148_s16] ss:$0 sm:$0xff] }
 0xb95   :  { %v2115_v2 = vadd.f32 %v2114_v4, %v2086_v50 }
 0xb97   :  { %v2144_v59 = vadd.f32 %v2143_v20, %v2115_v2 }
 0xb99   :  { %v2578_v12 = vpop.eup %2577  ;;  %v2156_v54 = vadd.f32 %v2535_v40, %v2144_v59 }
 0xb9a   :  { %v2088_v62 = vpop.f32.mrf.mxu3  ;;  %2191 = vrot.lane.b32.xlu0 %v2578_v12, %s2600_s24 }
 0xb9b   :  { %2579 = vtanh.f32 %v2156_v54  ;;  %v2089_v46 = vadd.f32 %v2088_v62, %v2059_v15 }
 0xb9d   :  { %v2118_v29 = vadd.f32 %v2117_v23, %v2089_v46 }
 0xb9f   :  { %v2147_v63 = vadd.f32 %v2146_v24, %v2118_v29 }
 0xba1   :  { %v2580_v32 = vpop.eup %2579  ;;  %v2157_v26 = vadd.f32 %v2535_v40, %v2147_v63 }
 0xba2   :  { %v2091_v35 = vpop.f32.mrf.mxu3  ;;  %2193 = vrot.lane.b32.xlu2 %v2580_v32, %s2600_s24  ;;  %2171 = vrot.lane.b32.xlu0 %v2595_v5, %s2600_s24 }
 0xba3   :  { %2581 = vtanh.f32 %v2157_v26  ;;  %v2092_v36 = vadd.f32 %v2091_v35, %v2062_v33 }
 0xba5   :  { %v2121_v38 = vadd.f32 %v2120_v3, %v2092_v36 }
 0xba7   :  { %v2150_v37 = vadd.f32 %v2149_v39, %v2121_v38 }
 0xba9   :  { %v2582_v27 = vpop.eup %2581  ;;  %v2158_v41 = vadd.f32 %v2535_v40, %v2150_v37 }
 0xbaa   :  { %2195 = vrot.lane.b32.xlu1 %v2582_v27, %s2600_s24  ;;  %2173 = vrot.lane.b32.xlu2 %v2596_v34, %s2600_s24 }
 0xbab   :  { %2583 = vtanh.f32 %v2158_v41 }
 0xbb1   :  { %v2584_v43 = vpop.eup %2583 }
 0xbb2   :  { %2197 = vrot.lane.b32.xlu0 %v2584_v43, %s2600_s24 }
 0xbfc   :  { %v2194_v9 = vpop.permute.xlu2 %2193 }
 0xbfd   :  { %v2204_v52 = vmul.f32 %v2194_v9, %v2184_v11 }
 0xbff   :  { %v2208_v10 = vadd.f32 %v2204_v52, %v2180_v42 }
 0xc01   :  { %2217 = vrot.lane.b32.xlu2 %v2208_v10, %s2602_s26 }
 0xc04   :  { %v2174_v60 = vpop.permute.xlu2 %2173 }
 0xc05   :  { %v2182_v57 = vmul.f32 %v2174_v60, %v3792_v6  ;;  %v2232_v6 = vld [vmem:[%s4149_s15] sm:$0xff] }
 0xc0c   :  { %v2192_v47 = vpop.permute.xlu0 %2191 }
 0xc0d   :  { %v2203_v28 = vmul.f32 %v2192_v47, %v2183_v45 }
 0xc0f   :  { %v2207_v14 = vadd.f32 %v2203_v28, %v2179_v48 }
 0xc11   :  { %2215 = vrot.lane.b32.xlu1 %v2207_v14, %s2602_s26 }
 0xc14   :  { %v2172_v51 = vpop.permute.xlu0 %2171 }
 0xc15   :  { %v2181_v56 = vmul.f32 %v2172_v51, %v3794_v49  ;;  %v2234_v49 = vld [vmem:[%s4149_s15 + $0x10] sm:$0xff] }
 0xc16   :  { %2261 = vmatpush.msrb.mxu2 %v2234_v49 }
 0xc18   :  { %2262 = vmatpush.msrb.mxu2 %v2233_v19 }
 0xc1a   :  { %2263 = vmatpush.msrb.mxu2 %v2232_v6 }
 0xc1c   :  { %v2196_v1 = vpop.permute.xlu1 %2195 }
 0xc1d   :  { %v2205_v55 = vmul.f32 %v2196_v1, %v2185_v0 }
 0xc1f   :  { %v2209_v21 = vadd.f32 %v2205_v55, %v2181_v56 }
 0xc21   :  { %2219 = vrot.lane.b32.xlu0 %v2209_v21, %s2602_s26 }
 0xc24   :  { %v2198_v53 = vpop.permute.xlu0 %2197 }
 0xc25   :  { %v2206_v18 = vmul.f32 %v2198_v53, %v2186_v13 }
 0xc27   :  { %v2210_v25 = vadd.f32 %v2206_v18, %v2182_v57 }
 0xc29   :  { %2221 = vrot.lane.b32.xlu1 %v2210_v25, %s2602_s26 }
 0xc5b   :  { %v2218_v30 = vpop.permute.xlu2 %2217 }
 0xc5c   :  { %2436 = vst.msk [vmem:[%s4141_s18 + $0x28] sm:$0xff] %vm123_vm0, %v2218_v30 }
 0xc83   :  { %v2216_v61 = vpop.permute.xlu1 %2215 }
 0xc84   :  { %2435 = vst.msk [vmem:[%s4141_s18 + $0x20] sm:$0xff] %vm123_vm0, %v2216_v61  ;;  %2439 = vmatmul.msk.f32.vlgmr.msrb.gmra.mxu2 %vm123_vm0, %v2216_v61 }
 0xc8c   :  { %2440 = vmatmul.msk.f32.gmra.mxu2 %vm123_vm0, %v2218_v30 }
 0xc93   :  { %v2220_v31 = vpop.permute.xlu0 %2219 }
 0xc94   :  { %2437 = vst.msk [vmem:[%s4141_s18 + $0x30] sm:$0xff] %vm123_vm0, %v2220_v31  ;;  %2441 = vmatmul.msk.f32.gmra.mxu2 %vm123_vm0, %v2220_v31 }
 0xc9b   :  { %v2222_v40 = vpop.permute.xlu1 %2221 }
 0xc9c   :  { %2438 = vst.msk [vmem:[%s4141_s18 + $0x38] sm:$0xff] %vm123_vm0, %v2222_v40  ;;  %2442 = vmatmul.msk.f32.gmra.mxu2 %vm123_vm0, %v2222_v40  ;;  %vm4171_vm0 = vmmov %vm4169_vm7 }
 0xc9d   :  { %vm4172_vm1 = vmmov %vm4171_vm0 }
 0xd07   :  { %v2265_v22 = vpop.f32.mrf.mxu2 }
 0xd08   :  { %v2266_v4 = vadd.f32 %v2536_v8, %v2265_v22 }
 0xd0a   :  { %2277 = vst.msk [vmem:[%s4150_s17] sm:$0xff] %vm4169_vm7, %v2266_v4 }
 0xd0f   :  { %v2268_v7 = vpop.f32.mrf.mxu2 }
 0xd10   :  { %v2269_v20 = vadd.f32 %v2536_v8, %v2268_v7 }
 0xd12   :  { %2278 = vst.msk [vmem:[%s4150_s17 + $0x8] sm:$0xff] %vm4170_vm8, %v2269_v20 }
 0xd17   :  { %v2271_v16 = vpop.f32.mrf.mxu2 }
 0xd18   :  { %v2272_v50 = vadd.f32 %v2536_v8, %v2271_v16 }
 0xd1a   :  { %2279 = vst.msk [vmem:[%s4150_s17 + $0x10] sm:$0xff] %vm4171_vm0, %v2272_v50 }
 0xd1f   :  { %v2274_v2 = vpop.f32.mrf.mxu2 }
 0xd20   :  { %v2275_v59 = vadd.f32 %v2536_v8, %v2274_v2 }
 0xd22   :  { %2280 = vst.msk [vmem:[%s4150_s17 + $0x18] sm:$0xff] %vm4172_vm1, %v2275_v59 }

</bundles_post_ra>
